<compile_context>
chip_gen: v5e
topology: v5e:2x2
jax: 0.10.0
libtpu: 0.0.40
codegen_flags: <defaults>
</compile_context>

<pallas_src>
import math

import jax
import jax.numpy as jnp
from jax.experimental import pallas as pl
from jax.experimental.pallas import tpu as pltpu

BATCH = 2
SEQ = 16
EMBED_DIM = 256          # small stand-in for the real 2048
NUM_HEADS = 2            # small stand-in for the real 16
HEAD_DIM = EMBED_DIM // NUM_HEADS
EPS = 1e-5               # nn.LayerNorm default

VMEM_LIMIT = 48 * 1024 * 1024        # explicit scoped-VMEM limit (safe on v5e/v6e/v7x)
_SQRT_2_OVER_PI = 0.7978845608028654


def _gelu_tanh(x):
    # tanh-approx GELU: tanh runs on the EUP (separate bundle slot); the rest is a few
    # VPU mul/adds. Max deviation from exact erf-GELU ~1e-3 (covered by test tolerance).
    return 0.5 * x * (1.0 + jnp.tanh(_SQRT_2_OVER_PI * (x + 0.044715 * x * x * x)))


# --------------------------- LayerNorm kernel (row-parallel) ---------------------------
def _layernorm_kernel(x_ref, g_ref, b_ref, o_ref):
    x = x_ref[...]
    mean = jnp.mean(x, axis=-1, keepdims=True)
    var = jnp.mean(jnp.square(x - mean), axis=-1, keepdims=True)
    o_ref[...] = (x - mean) * jax.lax.rsqrt(var + EPS) * g_ref[...] + b_ref[...]


def layernorm(x, gamma, beta, *, tm=16):
    M, D = x.shape
    tm = min(tm, M)
    return pl.pallas_call(
        _layernorm_kernel,
        out_shape=jax.ShapeDtypeStruct((M, D), jnp.float32),
        grid_spec=pltpu.PrefetchScalarGridSpec(
            num_scalar_prefetch=0,
            grid=(M // tm,),
            in_specs=[pl.BlockSpec((tm, D), lambda i: (i, 0)),
                      pl.BlockSpec((1, D), lambda i: (0, 0)),
                      pl.BlockSpec((1, D), lambda i: (0, 0))],
            out_specs=pl.BlockSpec((tm, D), lambda i: (i, 0))),
        compiler_params=pltpu.CompilerParams(
            dimension_semantics=("parallel",),
            vmem_limit_bytes=VMEM_LIMIT),
    )(x, gamma, beta)


# -------------------- streamed GEMM kernel: y = act(x @ w + b) [+ res] --------------------
def _make_gemm_kernel(activation, has_residual):
    def kernel(*refs):
        if has_residual:
            x_ref, w_ref, b_ref, r_ref, o_ref, acc_ref = refs
        else:
            x_ref, w_ref, b_ref, o_ref, acc_ref = refs
            r_ref = None
        k = pl.program_id(2)                       # reduction axis (last, "arbitrary")

        @pl.when(k == 0)
        def _():
            acc_ref[...] = jnp.zeros_like(acc_ref)

        acc_ref[...] += jnp.dot(x_ref[...].astype(jnp.bfloat16), w_ref[...],
                                preferred_element_type=jnp.float32)

        @pl.when(k == pl.num_programs(2) - 1)
        def _():
            y = acc_ref[...] + b_ref[...]          # bias only on the last K step
            if activation is not None:
                y = activation(y)
            if has_residual:
                y = y + r_ref[...].astype(jnp.float32)
            o_ref[...] = y.astype(o_ref.dtype)

    return kernel


def streamed_gemm(x, w, b, *, residual=None, activation=None,
                  out_dtype=jnp.float32, tm=None, tn=128, tk=128):
    """GEMM with bf16 K/N weight tiles streamed through VMEM and an f32 accumulator."""
    M, K = x.shape
    K2, N = w.shape
    assert K == K2
    tm = M if tm is None else tm
    assert M % tm == 0 and N % tn == 0 and K % tk == 0
    grid = (M // tm, N // tn, K // tk)             # reduction axis last

    in_specs = [pl.BlockSpec((tm, tk), lambda i, j, kk: (i, kk)),
                pl.BlockSpec((tk, tn), lambda i, j, kk: (kk, j)),
                pl.BlockSpec((1, tn), lambda i, j, kk: (0, j))]
    operands = [x, w, b]
    if residual is not None:
        in_specs.append(pl.BlockSpec((tm, tn), lambda i, j, kk: (i, j)))
        operands.append(residual)

    res_bytes = residual.size * residual.dtype.itemsize if residual is not None else 0
    cost = pl.CostEstimate(
        flops=2 * M * N * K,
        transcendentals=(M * N if activation is not None else 0),
        bytes_accessed=(x.size * x.dtype.itemsize + w.size * w.dtype.itemsize
                        + b.size * b.dtype.itemsize + res_bytes
                        + M * N * jnp.dtype(out_dtype).itemsize))

    return pl.pallas_call(
        _make_gemm_kernel(activation, residual is not None),
        out_shape=jax.ShapeDtypeStruct((M, N), out_dtype),
        grid_spec=pltpu.PrefetchScalarGridSpec(
            num_scalar_prefetch=0,
            grid=grid,
            in_specs=in_specs,
            out_specs=pl.BlockSpec((tm, tn), lambda i, j, kk: (i, j)),
            scratch_shapes=[pltpu.VMEM((tm, tn), jnp.float32)]),
        compiler_params=pltpu.CompilerParams(
            dimension_semantics=("parallel", "parallel", "arbitrary"),
            vmem_limit_bytes=VMEM_LIMIT),
        cost_estimate=cost,
    )(*operands)


# --------------------- attention kernel: one (batch, head) per grid step ---------------------
def _attention_head_kernel(q_ref, k_ref, v_ref, o_ref):
    # refs: (1, T, hd) bf16; Q was pre-scaled by 1/sqrt(hd) in the projection weights.
    q = q_ref[0]
    k = k_ref[0]
    v = v_ref[0]
    s = jax.lax.dot_general(q, k, (((1,), (1,)), ((), ())),
                            preferred_element_type=jnp.float32)       # (T, T) f32
    s = s - jnp.max(s, axis=-1, keepdims=True)
    p = jnp.exp(s)
    p = p * pl.reciprocal(jnp.sum(p, axis=-1, keepdims=True), approx=True)
    o_ref[0] = jnp.dot(p.astype(v.dtype), v,
                       preferred_element_type=jnp.float32).astype(o_ref.dtype)


def attention_heads(qkv, num_heads):
    """qkv: (B, T, 3D) bf16 -> (B, T, D) bf16. Heads handled by the grid; each head's
    output lands directly in its lane slice of the output via the out BlockSpec."""
    B, T, D3 = qkv.shape
    D = D3 // 3
    hd = D // num_heads
    H = num_heads
    block = (1, T, hd)
    cost = pl.CostEstimate(
        flops=4 * B * H * T * T * hd,
        transcendentals=B * H * T * T,
        bytes_accessed=qkv.size * qkv.dtype.itemsize + B * T * D * 2)
    return pl.pallas_call(
        _attention_head_kernel,
        out_shape=jax.ShapeDtypeStruct((B, T, D), jnp.bfloat16),
        grid_spec=pltpu.PrefetchScalarGridSpec(
            num_scalar_prefetch=0,
            grid=(B, H),
            in_specs=[pl.BlockSpec(block, lambda b, h: (b, 0, h)),          # Q head h
                      pl.BlockSpec(block, lambda b, h: (b, 0, H + h)),      # K head h
                      pl.BlockSpec(block, lambda b, h: (b, 0, 2 * H + h))], # V head h
            out_specs=pl.BlockSpec(block, lambda b, h: (b, 0, h))),
        compiler_params=pltpu.CompilerParams(
            dimension_semantics=("parallel", "parallel"),
            vmem_limit_bytes=VMEM_LIMIT),
        cost_estimate=cost,
    )(qkv, qkv, qkv)


# ----------------------------------- block forward -----------------------------------
def self_attention_block(x, kparams, num_heads=NUM_HEADS):
    B, T, D = x.shape
    x2 = x.reshape(B * T, D)

    # attention sub-block
    xn1 = layernorm(x2, kparams["atnorm_gamma"], kparams["atnorm_beta"])
    qkv = streamed_gemm(xn1, kparams["w_qkv"], kparams["b_qkv"],
                        out_dtype=jnp.bfloat16)                            # (B*T, 3D)
    attn = attention_heads(qkv.reshape(B, T, 3 * D), num_heads)            # (B, T, D)
    x1 = streamed_gemm(attn.reshape(B * T, D), kparams["w_out"], kparams["b_out"],
                       residual=x2, out_dtype=jnp.float32)                 # residual 1

    # MLP sub-block
    xn2 = layernorm(x1, kparams["mlpnorm_gamma"], kparams["mlpnorm_beta"])
    h = streamed_gemm(xn2, kparams["w_fc1"], kparams["b_fc1"],
                      activation=_gelu_tanh, out_dtype=jnp.bfloat16)       # (B*T, 4D)
    out = streamed_gemm(h, kparams["w_fc2"], kparams["b_fc2"],
                        residual=x1, out_dtype=jnp.float32)                # residual 2
    return out.reshape(B, T, D)


# ----------------------------------- params & reference -----------------------------------
def prepare_params(params, num_heads=NUM_HEADS):
    """One-time kernel param prep: fold 1/sqrt(head_dim) into the Q projection and cast
    matmul weights to bf16 (biases / LayerNorm params stay f32; MXU accumulates in f32)."""
    D = params["w_qkv"].shape[0]
    scale = 1.0 / math.sqrt(D // num_heads)
    bf16 = jnp.bfloat16
    out = dict(params)
    out["w_qkv"] = params["w_qkv"].at[:, :D].multiply(scale).astype(bf16)
    out["b_qkv"] = params["b_qkv"].at[:, :D].multiply(scale)
    out["w_out"] = params["w_out"].astype(bf16)
    out["w_fc1"] = params["w_fc1"].astype(bf16)
    out["w_fc2"] = params["w_fc2"].astype(bf16)
    return out


def init_params(key, embed_dim=EMBED_DIM):
    D = embed_dim
    ks = jax.random.split(key, 8)
    f32 = jnp.float32
    return {
        "atnorm_gamma": jnp.ones((1, D), f32),
        "atnorm_beta": jnp.zeros((1, D), f32),
        "w_qkv": 0.02 * jax.random.normal(ks[0], (D, 3 * D), f32),
        "b_qkv": 0.02 * jax.random.normal(ks[1], (1, 3 * D), f32),
        "w_out": 0.02 * jax.random.normal(ks[2], (D, D), f32),
        "b_out": 0.02 * jax.random.normal(ks[3], (1, D), f32),
        "mlpnorm_gamma": jnp.ones((1, D), f32),
        "mlpnorm_beta": jnp.zeros((1, D), f32),
        "w_fc1": 0.02 * jax.random.normal(ks[4], (D, 4 * D), f32),
        "b_fc1": 0.02 * jax.random.normal(ks[5], (1, 4 * D), f32),
        "w_fc2": 0.02 * jax.random.normal(ks[6], (4 * D, D), f32),
        "b_fc2": 0.02 * jax.random.normal(ks[7], (1, D), f32),
    }


def reference(x, p):
    """Pure-JAX f32 mirror of the PyTorch forward (flash path: no mask, exact GELU)."""
    def ln(t, g, b):
        m = t.mean(-1, keepdims=True)
        v = ((t - m) ** 2).mean(-1, keepdims=True)
        return (t - m) / jnp.sqrt(v + EPS) * g + b

    with jax.default_matmul_precision("highest"):
        B, T, D = x.shape
        xn = ln(x, p["atnorm_gamma"], p["atnorm_beta"])
        qkv = xn @ p["w_qkv"] + p["b_qkv"]
        q, k, v = jnp.split(qkv, 3, axis=-1)

        def split_heads(t):
            return t.reshape(B, T, NUM_HEADS, HEAD_DIM).transpose(0, 2, 1, 3)

        qh, kh, vh = split_heads(q), split_heads(k), split_heads(v)
        s = (qh / math.sqrt(HEAD_DIM)) @ kh.transpose(0, 1, 3, 2)
        a = jax.nn.softmax(s, axis=-1)
        o = (a @ vh).transpose(0, 2, 1, 3).reshape(B, T, D)
        x1 = x + (o @ p["w_out"] + p["b_out"])
        yn = ln(x1, p["mlpnorm_gamma"], p["mlpnorm_beta"])
        h = jax.nn.gelu(yn @ p["w_fc1"] + p["b_fc1"], approximate=False)
        return x1 + (h @ p["w_fc2"] + p["b_fc2"])


if __name__ == "__main__":
    key = jax.random.PRNGKey(0)
    kx, kp = jax.random.split(key)
    x = jax.random.normal(kx, (BATCH, SEQ, EMBED_DIM), jnp.float32)
    params = init_params(kp)
    kparams = prepare_params(params)       # one-time prep (bf16 weights, pre-scaled Q)

    fwd = jax.jit(self_attention_block)
    out = jax.block_until_ready(fwd(x, kparams))
    ref = reference(x, params)

    assert out.shape == x.shape and out.dtype == x.dtype
    max_diff = float(jnp.max(jnp.abs(out - ref)))
    # bf16 matmul operands (f32 accumulation) + tanh-GELU -> slightly looser tolerance
    if not jnp.allclose(out, ref, atol=2e-2, rtol=2e-2):
        raise AssertionError(f"Pallas kernel mismatch vs reference: max abs diff {max_diff}")
    print("KERNEL_OK")
</pallas_src>

<mosaic_0001>
module attributes {stable_mosaic.version = 11 : i64} {
  func.func @kernel(%arg0: i32, %arg1: i32, %arg2: i32, %arg3: memref<32x128xf32, #tpu.memory_space<vmem>>, %arg4: memref<128x128xbf16, #tpu.memory_space<vmem>>, %arg5: memref<1x128xf32, #tpu.memory_space<vmem>>, %arg6: memref<32x128xbf16, #tpu.memory_space<vmem>>, %arg7: memref<32x128xf32, #tpu.memory_space<vmem>>) attributes {dimension_semantics = [#tpu.dimension_semantics<parallel>, #tpu.dimension_semantics<parallel>, #tpu.dimension_semantics<arbitrary>], iteration_bounds = array<i64: 1, 6, 2>, scalar_prefetch = 0 : i64, scratch_operands = 1 : i64, tpu.core_type = #tpu.core_type<tc>, window_params = [{transform_indices = @transform_0, window_bounds = array<i64: 32, 128>}, {transform_indices = @transform_1, window_bounds = array<i64: 128, 128>}, {transform_indices = @transform_2, window_bounds = array<i64: 1, 128>}, {transform_indices = @transform_3, window_bounds = array<i64: 32, 128>}]} {
    %c0_i32 = arith.constant 0 : i32
    %0 = arith.cmpi eq, %arg2, %c0_i32 : i32
    %1 = arith.extui %0 : i1 to i32
    %c0_i32_0 = arith.constant 0 : i32
    %2 = arith.cmpi ne, %1, %c0_i32_0 : i32
    scf.if %2 {
      %cst_9 = arith.constant 0.000000e+00 : f32
      %13 = vector.broadcast %cst_9 : f32 to vector<32x128xf32>
      %c0_10 = arith.constant 0 : index
      %c0_11 = arith.constant 0 : index
      %14 = vector.load %arg7[%c0_10, %c0_11] : memref<32x128xf32, #tpu.memory_space<vmem>>, vector<32x128xf32>
      tpu.vector_store %arg7[%c0_10, %c0_11], %13 {strides = array<i32>} : memref<32x128xf32, #tpu.memory_space<vmem>>, vector<32x128xf32>,
    } else {
    }
    %c0 = arith.constant 0 : index
    %c0_1 = arith.constant 0 : index
    %3 = vector.load %arg7[%c0, %c0_1] : memref<32x128xf32, #tpu.memory_space<vmem>>, vector<32x128xf32>
    %c0_2 = arith.constant 0 : index
    %c0_3 = arith.constant 0 : index
    %4 = vector.load %arg3[%c0_2, %c0_3] : memref<32x128xf32, #tpu.memory_space<vmem>>, vector<32x128xf32>
    %5 = arith.truncf %4 : vector<32x128xf32> to vector<32x128xbf16>
    %c0_4 = arith.constant 0 : index
    %c0_5 = arith.constant 0 : index
    %6 = vector.load %arg4[%c0_4, %c0_5] : memref<128x128xbf16, #tpu.memory_space<vmem>>, vector<128x128xbf16>
    %cst = arith.constant dense<0.000000e+00> : vector<32x128xf32>
    %7 = tpu.matmul %5, %6, %cst {dimension_numbers = #tpu.dot_dimension_numbers<[1], [0], [0], [1], [0, 0, 1, 1], [], []>} : vector<32x128xbf16>, vector<128x128xbf16>, vector<32x128xf32> -> vector<32x128xf32>
    %8 = arith.addf %3, %7 : vector<32x128xf32>
    %c0_6 = arith.constant 0 : index
    %c0_7 = arith.constant 0 : index
    %9 = vector.load %arg7[%c0_6, %c0_7] : memref<32x128xf32, #tpu.memory_space<vmem>>, vector<32x128xf32>
    tpu.vector_store %arg7[%c0_6, %c0_7], %8 {strides = array<i32>} : memref<32x128xf32, #tpu.memory_space<vmem>>, vector<32x128xf32>,
    %c1_i32 = arith.constant 1 : i32
    %10 = arith.cmpi eq, %arg2, %c1_i32 : i32
    %11 = arith.extui %10 : i1 to i32
    %c0_i32_8 = arith.constant 0 : i32
    %12 = arith.cmpi ne, %11, %c0_i32_8 : i32
    scf.if %12 {
      %c0_9 = arith.constant 0 : index
      %c0_10 = arith.constant 0 : index
      %13 = vector.load %arg7[%c0_9, %c0_10] : memref<32x128xf32, #tpu.memory_space<vmem>>, vector<32x128xf32>
      %c0_11 = arith.constant 0 : index
      %c0_12 = arith.constant 0 : index
      %14 = vector.load %arg5[%c0_11, %c0_12] : memref<1x128xf32, #tpu.memory_space<vmem>>, vector<1x128xf32>
      %15 = vector.broadcast %14 : vector<1x128xf32> to vector<32x128xf32>
      %16 = arith.addf %13, %15 : vector<32x128xf32>
      %17 = arith.truncf %16 : vector<32x128xf32> to vector<32x128xbf16>
      %c0_13 = arith.constant 0 : index
      %c0_14 = arith.constant 0 : index
      %18 = vector.load %arg6[%c0_13, %c0_14] : memref<32x128xbf16, #tpu.memory_space<vmem>>, vector<32x128xbf16>
      tpu.vector_store %arg6[%c0_13, %c0_14], %17 {strides = array<i32>} : memref<32x128xbf16, #tpu.memory_space<vmem>>, vector<32x128xbf16>,
    } else {
    }
    return
  }
  func.func @transform_0(%arg0: i32, %arg1: i32, %arg2: i32) -> (i32, i32) {
    %c0_i32 = arith.constant 0 : i32
    return %arg0, %arg2 : i32, i32
  }
  func.func @transform_1(%arg0: i32, %arg1: i32, %arg2: i32) -> (i32, i32) {
    %c0_i32 = arith.constant 0 : i32
    return %arg2, %arg1 : i32, i32
  }
  func.func @transform_2(%arg0: i32, %arg1: i32, %arg2: i32) -> (i32, i32) {
    %c0_i32 = arith.constant 0 : i32
    %c0_i32_0 = arith.constant 0 : i32
    return %c0_i32, %arg1 : i32, i32
  }
  func.func @transform_3(%arg0: i32, %arg1: i32, %arg2: i32) -> (i32, i32) {
    %c0_i32 = arith.constant 0 : i32
    return %arg0, %arg1 : i32, i32
  }
}

module attributes {stable_mosaic.version = 11 : i64} {
  func.func @kernel(%arg0: i32, %arg1: i32, %arg2: i32, %arg3: memref<32x128xbf16, #tpu.memory_space<vmem>>, %arg4: memref<128x128xbf16, #tpu.memory_space<vmem>>, %arg5: memref<1x128xf32, #tpu.memory_space<vmem>>, %arg6: memref<32x128xf32, #tpu.memory_space<vmem>>, %arg7: memref<32x128xf32, #tpu.memory_space<vmem>>, %arg8: memref<32x128xf32, #tpu.memory_space<vmem>>) attributes {dimension_semantics = [#tpu.dimension_semantics<parallel>, #tpu.dimension_semantics<parallel>, #tpu.dimension_semantics<arbitrary>], iteration_bounds = array<i64: 1, 2, 2>, scalar_prefetch = 0 : i64, scratch_operands = 1 : i64, tpu.core_type = #tpu.core_type<tc>, window_params = [{transform_indices = @transform_0, window_bounds = array<i64: 32, 128>}, {transform_indices = @transform_1, window_bounds = array<i64: 128, 128>}, {transform_indices = @transform_2, window_bounds = array<i64: 1, 128>}, {transform_indices = @transform_3, window_bounds = array<i64: 32, 128>}, {transform_indices = @transform_4, window_bounds = array<i64: 32, 128>}]} {
    %c0_i32 = arith.constant 0 : i32
    %0 = arith.cmpi eq, %arg2, %c0_i32 : i32
    %1 = arith.extui %0 : i1 to i32
    %c0_i32_0 = arith.constant 0 : i32
    %2 = arith.cmpi ne, %1, %c0_i32_0 : i32
    scf.if %2 {
      %cst_9 = arith.constant 0.000000e+00 : f32
      %12 = vector.broadcast %cst_9 : f32 to vector<32x128xf32>
      %c0_10 = arith.constant 0 : index
      %c0_11 = arith.constant 0 : index
      %13 = vector.load %arg8[%c0_10, %c0_11] : memref<32x128xf32, #tpu.memory_space<vmem>>, vector<32x128xf32>
      tpu.vector_store %arg8[%c0_10, %c0_11], %12 {strides = array<i32>} : memref<32x128xf32, #tpu.memory_space<vmem>>, vector<32x128xf32>,
    } else {
    }
    %c0 = arith.constant 0 : index
    %c0_1 = arith.constant 0 : index
    %3 = vector.load %arg8[%c0, %c0_1] : memref<32x128xf32, #tpu.memory_space<vmem>>, vector<32x128xf32>
    %c0_2 = arith.constant 0 : index
    %c0_3 = arith.constant 0 : index
    %4 = vector.load %arg3[%c0_2, %c0_3] : memref<32x128xbf16, #tpu.memory_space<vmem>>, vector<32x128xbf16>
    %c0_4 = arith.constant 0 : index
    %c0_5 = arith.constant 0 : index
    %5 = vector.load %arg4[%c0_4, %c0_5] : memref<128x128xbf16, #tpu.memory_space<vmem>>, vector<128x128xbf16>
    %cst = arith.constant dense<0.000000e+00> : vector<32x128xf32>
    %6 = tpu.matmul %4, %5, %cst {dimension_numbers = #tpu.dot_dimension_numbers<[1], [0], [0], [1], [0, 0, 1, 1], [], []>} : vector<32x128xbf16>, vector<128x128xbf16>, vector<32x128xf32> -> vector<32x128xf32>
    %7 = arith.addf %3, %6 : vector<32x128xf32>
    %c0_6 = arith.constant 0 : index
    %c0_7 = arith.constant 0 : index
    %8 = vector.load %arg8[%c0_6, %c0_7] : memref<32x128xf32, #tpu.memory_space<vmem>>, vector<32x128xf32>
    tpu.vector_store %arg8[%c0_6, %c0_7], %7 {strides = array<i32>} : memref<32x128xf32, #tpu.memory_space<vmem>>, vector<32x128xf32>,
    %c1_i32 = arith.constant 1 : i32
    %9 = arith.cmpi eq, %arg2, %c1_i32 : i32
    %10 = arith.extui %9 : i1 to i32
    %c0_i32_8 = arith.constant 0 : i32
    %11 = arith.cmpi ne, %10, %c0_i32_8 : i32
    scf.if %11 {
      %c0_9 = arith.constant 0 : index
      %c0_10 = arith.constant 0 : index
      %12 = vector.load %arg8[%c0_9, %c0_10] : memref<32x128xf32, #tpu.memory_space<vmem>>, vector<32x128xf32>
      %c0_11 = arith.constant 0 : index
      %c0_12 = arith.constant 0 : index
      %13 = vector.load %arg5[%c0_11, %c0_12] : memref<1x128xf32, #tpu.memory_space<vmem>>, vector<1x128xf32>
      %14 = vector.broadcast %13 : vector<1x128xf32> to vector<32x128xf32>
      %15 = arith.addf %12, %14 : vector<32x128xf32>
      %c0_13 = arith.constant 0 : index
      %c0_14 = arith.constant 0 : index
      %16 = vector.load %arg6[%c0_13, %c0_14] : memref<32x128xf32, #tpu.memory_space<vmem>>, vector<32x128xf32>
      %17 = arith.addf %15, %16 : vector<32x128xf32>
      %c0_15 = arith.constant 0 : index
      %c0_16 = arith.constant 0 : index
      %18 = vector.load %arg7[%c0_15, %c0_16] : memref<32x128xf32, #tpu.memory_space<vmem>>, vector<32x128xf32>
      tpu.vector_store %arg7[%c0_15, %c0_16], %17 {strides = array<i32>} : memref<32x128xf32, #tpu.memory_space<vmem>>, vector<32x128xf32>,
    } else {
    }
    return
  }
  func.func @transform_0(%arg0: i32, %arg1: i32, %arg2: i32) -> (i32, i32) {
    %c0_i32 = arith.constant 0 : i32
    return %arg0, %arg2 : i32, i32
  }
  func.func @transform_1(%arg0: i32, %arg1: i32, %arg2: i32) -> (i32, i32) {
    %c0_i32 = arith.constant 0 : i32
    return %arg2, %arg1 : i32, i32
  }
  func.func @transform_2(%arg0: i32, %arg1: i32, %arg2: i32) -> (i32, i32) {
    %c0_i32 = arith.constant 0 : i32
    %c0_i32_0 = arith.constant 0 : i32
    return %c0_i32, %arg1 : i32, i32
  }
  func.func @transform_3(%arg0: i32, %arg1: i32, %arg2: i32) -> (i32, i32) {
    %c0_i32 = arith.constant 0 : i32
    return %arg0, %arg1 : i32, i32
  }
  func.func @transform_4(%arg0: i32, %arg1: i32, %arg2: i32) -> (i32, i32) {
    %c0_i32 = arith.constant 0 : i32
    return %arg0, %arg1 : i32, i32
  }
}

module attributes {stable_mosaic.version = 11 : i64} {
  func.func @_attention_head_kernel(%arg0: i32, %arg1: i32, %arg2: memref<1x16x128xbf16, #tpu.memory_space<vmem>>, %arg3: memref<1x16x128xbf16, #tpu.memory_space<vmem>>, %arg4: memref<1x16x128xbf16, #tpu.memory_space<vmem>>, %arg5: memref<1x16x128xbf16, #tpu.memory_space<vmem>>) attributes {dimension_semantics = [#tpu.dimension_semantics<parallel>, #tpu.dimension_semantics<parallel>], iteration_bounds = array<i64: 2, 2>, scalar_prefetch = 0 : i64, scratch_operands = 0 : i64, tpu.core_type = #tpu.core_type<tc>, window_params = [{transform_indices = @transform_0, window_bounds = array<i64: 1, 16, 128>}, {transform_indices = @transform_1, window_bounds = array<i64: 1, 16, 128>}, {transform_indices = @transform_2, window_bounds = array<i64: 1, 16, 128>}, {transform_indices = @transform_3, window_bounds = array<i64: 1, 16, 128>}]} {
    %c0 = arith.constant 0 : index
    %c0_0 = arith.constant 0 : index
    %c0_1 = arith.constant 0 : index
    %0 = vector.load %arg2[%c0, %c0_0, %c0_1] : memref<1x16x128xbf16, #tpu.memory_space<vmem>>, vector<1x16x128xbf16>
    %1 = vector.shape_cast %0 : vector<1x16x128xbf16> to vector<16x128xbf16>
    %c0_2 = arith.constant 0 : index
    %c0_3 = arith.constant 0 : index
    %c0_4 = arith.constant 0 : index
    %2 = vector.load %arg3[%c0_2, %c0_3, %c0_4] : memref<1x16x128xbf16, #tpu.memory_space<vmem>>, vector<1x16x128xbf16>
    %3 = vector.shape_cast %2 : vector<1x16x128xbf16> to vector<16x128xbf16>
    %c0_5 = arith.constant 0 : index
    %c0_6 = arith.constant 0 : index
    %c0_7 = arith.constant 0 : index
    %4 = vector.load %arg4[%c0_5, %c0_6, %c0_7] : memref<1x16x128xbf16, #tpu.memory_space<vmem>>, vector<1x16x128xbf16>
    %5 = vector.shape_cast %4 : vector<1x16x128xbf16> to vector<16x128xbf16>
    %cst = arith.constant dense<0.000000e+00> : vector<16x16xf32>
    %6 = tpu.matmul %1, %3, %cst {dimension_numbers = #tpu.dot_dimension_numbers<[1], [1], [0], [0], [0, 0, 1, 0], [], []>} : vector<16x128xbf16>, vector<16x128xbf16>, vector<16x16xf32> -> vector<16x16xf32>
    %cst_8 = arith.constant dense<0xFF800000> : vector<16xf32>
    %7 = vector.multi_reduction <maximumf>, %6, %cst_8 [1] : vector<16x16xf32> to vector<16xf32>
    %8 = vector.shape_cast %7 : vector<16xf32> to vector<16x1xf32>
    %9 = vector.broadcast %8 : vector<16x1xf32> to vector<16x16xf32>
    %10 = arith.subf %6, %9 : vector<16x16xf32>
    %11 = math.exp %10 : vector<16x16xf32>
    %cst_9 = arith.constant dense<0.000000e+00> : vector<16xf32>
    %12 = vector.multi_reduction <add>, %11, %cst_9 [1] : vector<16x16xf32> to vector<16xf32>
    %13 = vector.shape_cast %12 : vector<16xf32> to vector<16x1xf32>
    %14 = tpu.reciprocal %13 {approx = true} : vector<16x1xf32> -> vector<16x1xf32>
    %15 = vector.broadcast %14 : vector<16x1xf32> to vector<16x16xf32>
    %16 = arith.mulf %11, %15 : vector<16x16xf32>
    %17 = arith.truncf %16 : vector<16x16xf32> to vector<16x16xbf16>
    %cst_10 = arith.constant dense<0.000000e+00> : vector<16x128xf32>
    %18 = tpu.matmul %17, %5, %cst_10 {dimension_numbers = #tpu.dot_dimension_numbers<[1], [0], [0], [1], [0, 0, 1, 1], [], []>} : vector<16x16xbf16>, vector<16x128xbf16>, vector<16x128xf32> -> vector<16x128xf32>
    %19 = arith.truncf %18 : vector<16x128xf32> to vector<16x128xbf16>
    %c0_11 = arith.constant 0 : index
    %c0_12 = arith.constant 0 : index
    %c0_13 = arith.constant 0 : index
    %20 = vector.load %arg5[%c0_11, %c0_12, %c0_13] : memref<1x16x128xbf16, #tpu.memory_space<vmem>>, vector<1x16x128xbf16>
    %21 = vector.shape_cast %20 : vector<1x16x128xbf16> to vector<16x128xbf16>
    %22 = vector.shape_cast %19 : vector<16x128xbf16> to vector<1x16x128xbf16>
    tpu.vector_store %arg5[%c0_11, %c0_12, %c0_13], %22 {strides = array<i32>} : memref<1x16x128xbf16, #tpu.memory_space<vmem>>, vector<1x16x128xbf16>,
    return
  }
  func.func @transform_0(%arg0: i32, %arg1: i32) -> (i32, i32, i32) {
    %c0_i32 = arith.constant 0 : i32
    %c0_i32_0 = arith.constant 0 : i32
    return %arg0, %c0_i32, %arg1 : i32, i32, i32
  }
  func.func @transform_1(%arg0: i32, %arg1: i32) -> (i32, i32, i32) {
    %c2_i32 = arith.constant 2 : i32
    %0 = arith.addi %c2_i32, %arg1 : i32
    %c0_i32 = arith.constant 0 : i32
    %c0_i32_0 = arith.constant 0 : i32
    return %arg0, %c0_i32, %0 : i32, i32, i32
  }
  func.func @transform_2(%arg0: i32, %arg1: i32) -> (i32, i32, i32) {
    %c4_i32 = arith.constant 4 : i32
    %0 = arith.addi %c4_i32, %arg1 : i32
    %c0_i32 = arith.constant 0 : i32
    %c0_i32_0 = arith.constant 0 : i32
    return %arg0, %c0_i32, %0 : i32, i32, i32
  }
  func.func @transform_3(%arg0: i32, %arg1: i32) -> (i32, i32, i32) {
    %c0_i32 = arith.constant 0 : i32
    %c0_i32_0 = arith.constant 0 : i32
    return %arg0, %c0_i32, %arg1 : i32, i32, i32
  }
}

module attributes {stable_mosaic.version = 11 : i64} {
  func.func @_layernorm_kernel(%arg0: i32, %arg1: memref<16x256xf32, #tpu.memory_space<vmem>>, %arg2: memref<1x256xf32, #tpu.memory_space<vmem>>, %arg3: memref<1x256xf32, #tpu.memory_space<vmem>>, %arg4: memref<16x256xf32, #tpu.memory_space<vmem>>) attributes {dimension_semantics = [#tpu.dimension_semantics<parallel>], iteration_bounds = array<i64: 2>, scalar_prefetch = 0 : i64, scratch_operands = 0 : i64, tpu.core_type = #tpu.core_type<tc>, window_params = [{transform_indices = @transform_0, window_bounds = array<i64: 16, 256>}, {pipeline_mode = #tpu.pipeline_mode<synchronous>, transform_indices = @transform_1, window_bounds = array<i64: 1, 256>}, {pipeline_mode = #tpu.pipeline_mode<synchronous>, transform_indices = @transform_2, window_bounds = array<i64: 1, 256>}, {transform_indices = @transform_3, window_bounds = array<i64: 16, 256>}]} {
    %c0 = arith.constant 0 : index
    %c0_0 = arith.constant 0 : index
    %0 = vector.load %arg1[%c0, %c0_0] : memref<16x256xf32, #tpu.memory_space<vmem>>, vector<16x256xf32>
    %cst = arith.constant dense<0.000000e+00> : vector<16xf32>
    %1 = vector.multi_reduction <add>, %0, %cst [1] : vector<16x256xf32> to vector<16xf32>
    %2 = vector.shape_cast %1 : vector<16xf32> to vector<16x1xf32>
    %cst_1 = arith.constant 2.560000e+02 : f32
    %3 = vector.broadcast %cst_1 : f32 to vector<16x1xf32>
    %4 = arith.divf %2, %3 : vector<16x1xf32>
    %5 = vector.broadcast %4 : vector<16x1xf32> to vector<16x256xf32>
    %6 = arith.subf %0, %5 : vector<16x256xf32>
    %7 = arith.mulf %6, %6 : vector<16x256xf32>
    %cst_2 = arith.constant dense<0.000000e+00> : vector<16xf32>
    %8 = vector.multi_reduction <add>, %7, %cst_2 [1] : vector<16x256xf32> to vector<16xf32>
    %9 = vector.shape_cast %8 : vector<16xf32> to vector<16x1xf32>
    %cst_3 = arith.constant 2.560000e+02 : f32
    %10 = vector.broadcast %cst_3 : f32 to vector<16x1xf32>
    %11 = arith.divf %9, %10 : vector<16x1xf32>
    %12 = vector.broadcast %4 : vector<16x1xf32> to vector<16x256xf32>
    %13 = arith.subf %0, %12 : vector<16x256xf32>
    %cst_4 = arith.constant 9.99999974E-6 : f32
    %14 = vector.broadcast %cst_4 : f32 to vector<16x1xf32>
    %15 = arith.addf %11, %14 : vector<16x1xf32>
    %16 = math.rsqrt %15 : vector<16x1xf32>
    %17 = vector.broadcast %16 : vector<16x1xf32> to vector<16x256xf32>
    %18 = arith.mulf %13, %17 : vector<16x256xf32>
    %c0_5 = arith.constant 0 : index
    %c0_6 = arith.constant 0 : index
    %19 = vector.load %arg2[%c0_5, %c0_6] : memref<1x256xf32, #tpu.memory_space<vmem>>, vector<1x256xf32>
    %20 = vector.broadcast %19 : vector<1x256xf32> to vector<16x256xf32>
    %21 = arith.mulf %18, %20 : vector<16x256xf32>
    %c0_7 = arith.constant 0 : index
    %c0_8 = arith.constant 0 : index
    %22 = vector.load %arg3[%c0_7, %c0_8] : memref<1x256xf32, #tpu.memory_space<vmem>>, vector<1x256xf32>
    %23 = vector.broadcast %22 : vector<1x256xf32> to vector<16x256xf32>
    %24 = arith.addf %21, %23 : vector<16x256xf32>
    %c0_9 = arith.constant 0 : index
    %c0_10 = arith.constant 0 : index
    %25 = vector.load %arg4[%c0_9, %c0_10] : memref<16x256xf32, #tpu.memory_space<vmem>>, vector<16x256xf32>
    tpu.vector_store %arg4[%c0_9, %c0_10], %24 {strides = array<i32>} : memref<16x256xf32, #tpu.memory_space<vmem>>, vector<16x256xf32>,
    return
  }
  func.func @transform_0(%arg0: i32) -> (i32, i32) {
    %c0_i32 = arith.constant 0 : i32
    %c0_i32_0 = arith.constant 0 : i32
    return %arg0, %c0_i32 : i32, i32
  }
  func.func @transform_1(%arg0: i32) -> (i32, i32) {
    %c0_i32 = arith.constant 0 : i32
    %c0_i32_0 = arith.constant 0 : i32
    %c0_i32_1 = arith.constant 0 : i32
    return %c0_i32, %c0_i32_0 : i32, i32
  }
  func.func @transform_2(%arg0: i32) -> (i32, i32) {
    %c0_i32 = arith.constant 0 : i32
    %c0_i32_0 = arith.constant 0 : i32
    %c0_i32_1 = arith.constant 0 : i32
    return %c0_i32, %c0_i32_0 : i32, i32
  }
  func.func @transform_3(%arg0: i32) -> (i32, i32) {
    %c0_i32 = arith.constant 0 : i32
    %c0_i32_0 = arith.constant 0 : i32
    return %arg0, %c0_i32 : i32, i32
  }
}

module attributes {stable_mosaic.version = 11 : i64} {
  func.func @_layernorm_kernel(%arg0: i32, %arg1: memref<16x256xf32, #tpu.memory_space<vmem>>, %arg2: memref<1x256xf32, #tpu.memory_space<vmem>>, %arg3: memref<1x256xf32, #tpu.memory_space<vmem>>, %arg4: memref<16x256xf32, #tpu.memory_space<vmem>>) attributes {dimension_semantics = [#tpu.dimension_semantics<parallel>], iteration_bounds = array<i64: 2>, scalar_prefetch = 0 : i64, scratch_operands = 0 : i64, tpu.core_type = #tpu.core_type<tc>, window_params = [{transform_indices = @transform_0, window_bounds = array<i64: 16, 256>}, {pipeline_mode = #tpu.pipeline_mode<synchronous>, transform_indices = @transform_1, window_bounds = array<i64: 1, 256>}, {pipeline_mode = #tpu.pipeline_mode<synchronous>, transform_indices = @transform_2, window_bounds = array<i64: 1, 256>}, {transform_indices = @transform_3, window_bounds = array<i64: 16, 256>}]} {
    %c0 = arith.constant 0 : index
    %c0_0 = arith.constant 0 : index
    %0 = vector.load %arg1[%c0, %c0_0] : memref<16x256xf32, #tpu.memory_space<vmem>>, vector<16x256xf32>
    %cst = arith.constant dense<0.000000e+00> : vector<16xf32>
    %1 = vector.multi_reduction <add>, %0, %cst [1] : vector<16x256xf32> to vector<16xf32>
    %2 = vector.shape_cast %1 : vector<16xf32> to vector<16x1xf32>
    %cst_1 = arith.constant 2.560000e+02 : f32
    %3 = vector.broadcast %cst_1 : f32 to vector<16x1xf32>
    %4 = arith.divf %2, %3 : vector<16x1xf32>
    %5 = vector.broadcast %4 : vector<16x1xf32> to vector<16x256xf32>
    %6 = arith.subf %0, %5 : vector<16x256xf32>
    %7 = arith.mulf %6, %6 : vector<16x256xf32>
    %cst_2 = arith.constant dense<0.000000e+00> : vector<16xf32>
    %8 = vector.multi_reduction <add>, %7, %cst_2 [1] : vector<16x256xf32> to vector<16xf32>
    %9 = vector.shape_cast %8 : vector<16xf32> to vector<16x1xf32>
    %cst_3 = arith.constant 2.560000e+02 : f32
    %10 = vector.broadcast %cst_3 : f32 to vector<16x1xf32>
    %11 = arith.divf %9, %10 : vector<16x1xf32>
    %12 = vector.broadcast %4 : vector<16x1xf32> to vector<16x256xf32>
    %13 = arith.subf %0, %12 : vector<16x256xf32>
    %cst_4 = arith.constant 9.99999974E-6 : f32
    %14 = vector.broadcast %cst_4 : f32 to vector<16x1xf32>
    %15 = arith.addf %11, %14 : vector<16x1xf32>
    %16 = math.rsqrt %15 : vector<16x1xf32>
    %17 = vector.broadcast %16 : vector<16x1xf32> to vector<16x256xf32>
    %18 = arith.mulf %13, %17 : vector<16x256xf32>
    %c0_5 = arith.constant 0 : index
    %c0_6 = arith.constant 0 : index
    %19 = vector.load %arg2[%c0_5, %c0_6] : memref<1x256xf32, #tpu.memory_space<vmem>>, vector<1x256xf32>
    %20 = vector.broadcast %19 : vector<1x256xf32> to vector<16x256xf32>
    %21 = arith.mulf %18, %20 : vector<16x256xf32>
    %c0_7 = arith.constant 0 : index
    %c0_8 = arith.constant 0 : index
    %22 = vector.load %arg3[%c0_7, %c0_8] : memref<1x256xf32, #tpu.memory_space<vmem>>, vector<1x256xf32>
    %23 = vector.broadcast %22 : vector<1x256xf32> to vector<16x256xf32>
    %24 = arith.addf %21, %23 : vector<16x256xf32>
    %c0_9 = arith.constant 0 : index
    %c0_10 = arith.constant 0 : index
    %25 = vector.load %arg4[%c0_9, %c0_10] : memref<16x256xf32, #tpu.memory_space<vmem>>, vector<16x256xf32>
    tpu.vector_store %arg4[%c0_9, %c0_10], %24 {strides = array<i32>} : memref<16x256xf32, #tpu.memory_space<vmem>>, vector<16x256xf32>,
    return
  }
  func.func @transform_0(%arg0: i32) -> (i32, i32) {
    %c0_i32 = arith.constant 0 : i32
    %c0_i32_0 = arith.constant 0 : i32
    return %arg0, %c0_i32 : i32, i32
  }
  func.func @transform_1(%arg0: i32) -> (i32, i32) {
    %c0_i32 = arith.constant 0 : i32
    %c0_i32_0 = arith.constant 0 : i32
    %c0_i32_1 = arith.constant 0 : i32
    return %c0_i32, %c0_i32_0 : i32, i32
  }
  func.func @transform_2(%arg0: i32) -> (i32, i32) {
    %c0_i32 = arith.constant 0 : i32
    %c0_i32_0 = arith.constant 0 : i32
    %c0_i32_1 = arith.constant 0 : i32
    return %c0_i32, %c0_i32_0 : i32, i32
  }
  func.func @transform_3(%arg0: i32) -> (i32, i32) {
    %c0_i32 = arith.constant 0 : i32
    %c0_i32_0 = arith.constant 0 : i32
    return %arg0, %c0_i32 : i32, i32
  }
}

module attributes {stable_mosaic.version = 11 : i64} {
  func.func @kernel(%arg0: i32, %arg1: i32, %arg2: i32, %arg3: memref<32x128xbf16, #tpu.memory_space<vmem>>, %arg4: memref<128x128xbf16, #tpu.memory_space<vmem>>, %arg5: memref<1x128xf32, #tpu.memory_space<vmem>>, %arg6: memref<32x128xf32, #tpu.memory_space<vmem>>, %arg7: memref<32x128xf32, #tpu.memory_space<vmem>>, %arg8: memref<32x128xf32, #tpu.memory_space<vmem>>) attributes {dimension_semantics = [#tpu.dimension_semantics<parallel>, #tpu.dimension_semantics<parallel>, #tpu.dimension_semantics<arbitrary>], iteration_bounds = array<i64: 1, 2, 8>, scalar_prefetch = 0 : i64, scratch_operands = 1 : i64, tpu.core_type = #tpu.core_type<tc>, window_params = [{transform_indices = @transform_0, window_bounds = array<i64: 32, 128>}, {transform_indices = @transform_1, window_bounds = array<i64: 128, 128>}, {transform_indices = @transform_2, window_bounds = array<i64: 1, 128>}, {transform_indices = @transform_3, window_bounds = array<i64: 32, 128>}, {transform_indices = @transform_4, window_bounds = array<i64: 32, 128>}]} {
    %c0_i32 = arith.constant 0 : i32
    %0 = arith.cmpi eq, %arg2, %c0_i32 : i32
    %1 = arith.extui %0 : i1 to i32
    %c0_i32_0 = arith.constant 0 : i32
    %2 = arith.cmpi ne, %1, %c0_i32_0 : i32
    scf.if %2 {
      %cst_9 = arith.constant 0.000000e+00 : f32
      %12 = vector.broadcast %cst_9 : f32 to vector<32x128xf32>
      %c0_10 = arith.constant 0 : index
      %c0_11 = arith.constant 0 : index
      %13 = vector.load %arg8[%c0_10, %c0_11] : memref<32x128xf32, #tpu.memory_space<vmem>>, vector<32x128xf32>
      tpu.vector_store %arg8[%c0_10, %c0_11], %12 {strides = array<i32>} : memref<32x128xf32, #tpu.memory_space<vmem>>, vector<32x128xf32>,
    } else {
    }
    %c0 = arith.constant 0 : index
    %c0_1 = arith.constant 0 : index
    %3 = vector.load %arg8[%c0, %c0_1] : memref<32x128xf32, #tpu.memory_space<vmem>>, vector<32x128xf32>
    %c0_2 = arith.constant 0 : index
    %c0_3 = arith.constant 0 : index
    %4 = vector.load %arg3[%c0_2, %c0_3] : memref<32x128xbf16, #tpu.memory_space<vmem>>, vector<32x128xbf16>
    %c0_4 = arith.constant 0 : index
    %c0_5 = arith.constant 0 : index
    %5 = vector.load %arg4[%c0_4, %c0_5] : memref<128x128xbf16, #tpu.memory_space<vmem>>, vector<128x128xbf16>
    %cst = arith.constant dense<0.000000e+00> : vector<32x128xf32>
    %6 = tpu.matmul %4, %5, %cst {dimension_numbers = #tpu.dot_dimension_numbers<[1], [0], [0], [1], [0, 0, 1, 1], [], []>} : vector<32x128xbf16>, vector<128x128xbf16>, vector<32x128xf32> -> vector<32x128xf32>
    %7 = arith.addf %3, %6 : vector<32x128xf32>
    %c0_6 = arith.constant 0 : index
    %c0_7 = arith.constant 0 : index
    %8 = vector.load %arg8[%c0_6, %c0_7] : memref<32x128xf32, #tpu.memory_space<vmem>>, vector<32x128xf32>
    tpu.vector_store %arg8[%c0_6, %c0_7], %7 {strides = array<i32>} : memref<32x128xf32, #tpu.memory_space<vmem>>, vector<32x128xf32>,
    %c7_i32 = arith.constant 7 : i32
    %9 = arith.cmpi eq, %arg2, %c7_i32 : i32
    %10 = arith.extui %9 : i1 to i32
    %c0_i32_8 = arith.constant 0 : i32
    %11 = arith.cmpi ne, %10, %c0_i32_8 : i32
    scf.if %11 {
      %c0_9 = arith.constant 0 : index
      %c0_10 = arith.constant 0 : index
      %12 = vector.load %arg8[%c0_9, %c0_10] : memref<32x128xf32, #tpu.memory_space<vmem>>, vector<32x128xf32>
      %c0_11 = arith.constant 0 : index
      %c0_12 = arith.constant 0 : index
      %13 = vector.load %arg5[%c0_11, %c0_12] : memref<1x128xf32, #tpu.memory_space<vmem>>, vector<1x128xf32>
      %14 = vector.broadcast %13 : vector<1x128xf32> to vector<32x128xf32>
      %15 = arith.addf %12, %14 : vector<32x128xf32>
      %c0_13 = arith.constant 0 : index
      %c0_14 = arith.constant 0 : index
      %16 = vector.load %arg6[%c0_13, %c0_14] : memref<32x128xf32, #tpu.memory_space<vmem>>, vector<32x128xf32>
      %17 = arith.addf %15, %16 : vector<32x128xf32>
      %c0_15 = arith.constant 0 : index
      %c0_16 = arith.constant 0 : index
      %18 = vector.load %arg7[%c0_15, %c0_16] : memref<32x128xf32, #tpu.memory_space<vmem>>, vector<32x128xf32>
      tpu.vector_store %arg7[%c0_15, %c0_16], %17 {strides = array<i32>} : memref<32x128xf32, #tpu.memory_space<vmem>>, vector<32x128xf32>,
    } else {
    }
    return
  }
  func.func @transform_0(%arg0: i32, %arg1: i32, %arg2: i32) -> (i32, i32) {
    %c0_i32 = arith.constant 0 : i32
    return %arg0, %arg2 : i32, i32
  }
  func.func @transform_1(%arg0: i32, %arg1: i32, %arg2: i32) -> (i32, i32) {
    %c0_i32 = arith.constant 0 : i32
    return %arg2, %arg1 : i32, i32
  }
  func.func @transform_2(%arg0: i32, %arg1: i32, %arg2: i32) -> (i32, i32) {
    %c0_i32 = arith.constant 0 : i32
    %c0_i32_0 = arith.constant 0 : i32
    return %c0_i32, %arg1 : i32, i32
  }
  func.func @transform_3(%arg0: i32, %arg1: i32, %arg2: i32) -> (i32, i32) {
    %c0_i32 = arith.constant 0 : i32
    return %arg0, %arg1 : i32, i32
  }
  func.func @transform_4(%arg0: i32, %arg1: i32, %arg2: i32) -> (i32, i32) {
    %c0_i32 = arith.constant 0 : i32
    return %arg0, %arg1 : i32, i32
  }
}

module attributes {stable_mosaic.version = 11 : i64} {
  func.func @kernel(%arg0: i32, %arg1: i32, %arg2: i32, %arg3: memref<32x128xf32, #tpu.memory_space<vmem>>, %arg4: memref<128x128xbf16, #tpu.memory_space<vmem>>, %arg5: memref<1x128xf32, #tpu.memory_space<vmem>>, %arg6: memref<32x128xbf16, #tpu.memory_space<vmem>>, %arg7: memref<32x128xf32, #tpu.memory_space<vmem>>) attributes {dimension_semantics = [#tpu.dimension_semantics<parallel>, #tpu.dimension_semantics<parallel>, #tpu.dimension_semantics<arbitrary>], iteration_bounds = array<i64: 1, 8, 2>, scalar_prefetch = 0 : i64, scratch_operands = 1 : i64, tpu.core_type = #tpu.core_type<tc>, window_params = [{transform_indices = @transform_0, window_bounds = array<i64: 32, 128>}, {transform_indices = @transform_1, window_bounds = array<i64: 128, 128>}, {transform_indices = @transform_2, window_bounds = array<i64: 1, 128>}, {transform_indices = @transform_3, window_bounds = array<i64: 32, 128>}]} {
    %c0_i32 = arith.constant 0 : i32
    %0 = arith.cmpi eq, %arg2, %c0_i32 : i32
    %1 = arith.extui %0 : i1 to i32
    %c0_i32_0 = arith.constant 0 : i32
    %2 = arith.cmpi ne, %1, %c0_i32_0 : i32
    scf.if %2 {
      %cst_9 = arith.constant 0.000000e+00 : f32
      %13 = vector.broadcast %cst_9 : f32 to vector<32x128xf32>
      %c0_10 = arith.constant 0 : index
      %c0_11 = arith.constant 0 : index
      %14 = vector.load %arg7[%c0_10, %c0_11] : memref<32x128xf32, #tpu.memory_space<vmem>>, vector<32x128xf32>
      tpu.vector_store %arg7[%c0_10, %c0_11], %13 {strides = array<i32>} : memref<32x128xf32, #tpu.memory_space<vmem>>, vector<32x128xf32>,
    } else {
    }
    %c0 = arith.constant 0 : index
    %c0_1 = arith.constant 0 : index
    %3 = vector.load %arg7[%c0, %c0_1] : memref<32x128xf32, #tpu.memory_space<vmem>>, vector<32x128xf32>
    %c0_2 = arith.constant 0 : index
    %c0_3 = arith.constant 0 : index
    %4 = vector.load %arg3[%c0_2, %c0_3] : memref<32x128xf32, #tpu.memory_space<vmem>>, vector<32x128xf32>
    %5 = arith.truncf %4 : vector<32x128xf32> to vector<32x128xbf16>
    %c0_4 = arith.constant 0 : index
    %c0_5 = arith.constant 0 : index
    %6 = vector.load %arg4[%c0_4, %c0_5] : memref<128x128xbf16, #tpu.memory_space<vmem>>, vector<128x128xbf16>
    %cst = arith.constant dense<0.000000e+00> : vector<32x128xf32>
    %7 = tpu.matmul %5, %6, %cst {dimension_numbers = #tpu.dot_dimension_numbers<[1], [0], [0], [1], [0, 0, 1, 1], [], []>} : vector<32x128xbf16>, vector<128x128xbf16>, vector<32x128xf32> -> vector<32x128xf32>
    %8 = arith.addf %3, %7 : vector<32x128xf32>
    %c0_6 = arith.constant 0 : index
    %c0_7 = arith.constant 0 : index
    %9 = vector.load %arg7[%c0_6, %c0_7] : memref<32x128xf32, #tpu.memory_space<vmem>>, vector<32x128xf32>
    tpu.vector_store %arg7[%c0_6, %c0_7], %8 {strides = array<i32>} : memref<32x128xf32, #tpu.memory_space<vmem>>, vector<32x128xf32>,
    %c1_i32 = arith.constant 1 : i32
    %10 = arith.cmpi eq, %arg2, %c1_i32 : i32
    %11 = arith.extui %10 : i1 to i32
    %c0_i32_8 = arith.constant 0 : i32
    %12 = arith.cmpi ne, %11, %c0_i32_8 : i32
    scf.if %12 {
      %c0_9 = arith.constant 0 : index
      %c0_10 = arith.constant 0 : index
      %13 = vector.load %arg7[%c0_9, %c0_10] : memref<32x128xf32, #tpu.memory_space<vmem>>, vector<32x128xf32>
      %c0_11 = arith.constant 0 : index
      %c0_12 = arith.constant 0 : index
      %14 = vector.load %arg5[%c0_11, %c0_12] : memref<1x128xf32, #tpu.memory_space<vmem>>, vector<1x128xf32>
      %15 = vector.broadcast %14 : vector<1x128xf32> to vector<32x128xf32>
      %16 = arith.addf %13, %15 : vector<32x128xf32>
      %cst_13 = arith.constant 5.000000e-01 : f32
      %17 = vector.broadcast %cst_13 : f32 to vector<32x128xf32>
      %18 = arith.mulf %17, %16 : vector<32x128xf32>
      %cst_14 = arith.constant 4.471500e-02 : f32
      %19 = vector.broadcast %cst_14 : f32 to vector<32x128xf32>
      %20 = arith.mulf %19, %16 : vector<32x128xf32>
      %21 = arith.mulf %20, %16 : vector<32x128xf32>
      %22 = arith.mulf %21, %16 : vector<32x128xf32>
      %23 = arith.addf %16, %22 : vector<32x128xf32>
      %cst_15 = arith.constant 0.797884583 : f32
      %24 = vector.broadcast %cst_15 : f32 to vector<32x128xf32>
      %25 = arith.mulf %24, %23 : vector<32x128xf32>
      %26 = math.tanh %25 : vector<32x128xf32>
      %cst_16 = arith.constant 1.000000e+00 : f32
      %27 = vector.broadcast %cst_16 : f32 to vector<32x128xf32>
      %28 = arith.addf %27, %26 : vector<32x128xf32>
      %29 = arith.mulf %18, %28 : vector<32x128xf32>
      %30 = arith.truncf %29 : vector<32x128xf32> to vector<32x128xbf16>
      %c0_17 = arith.constant 0 : index
      %c0_18 = arith.constant 0 : index
      %31 = vector.load %arg6[%c0_17, %c0_18] : memref<32x128xbf16, #tpu.memory_space<vmem>>, vector<32x128xbf16>
      tpu.vector_store %arg6[%c0_17, %c0_18], %30 {strides = array<i32>} : memref<32x128xbf16, #tpu.memory_space<vmem>>, vector<32x128xbf16>,
    } else {
    }
    return
  }
  func.func @transform_0(%arg0: i32, %arg1: i32, %arg2: i32) -> (i32, i32) {
    %c0_i32 = arith.constant 0 : i32
    return %arg0, %arg2 : i32, i32
  }
  func.func @transform_1(%arg0: i32, %arg1: i32, %arg2: i32) -> (i32, i32) {
    %c0_i32 = arith.constant 0 : i32
    return %arg2, %arg1 : i32, i32
  }
  func.func @transform_2(%arg0: i32, %arg1: i32, %arg2: i32) -> (i32, i32) {
    %c0_i32 = arith.constant 0 : i32
    %c0_i32_0 = arith.constant 0 : i32
    return %c0_i32, %arg1 : i32, i32
  }
  func.func @transform_3(%arg0: i32, %arg1: i32, %arg2: i32) -> (i32, i32) {
    %c0_i32 = arith.constant 0 : i32
    return %arg0, %arg1 : i32, i32
  }
}

</mosaic_0001>

<bundles_post_ra>
// kernel: self_attention_block.10
= control target key start
LH: loop header
LB: loop body
LE: loop exit
PB: predicated region body
PF: predicated region fallthrough
CT: control target
= control target key end

     0   :  { %s1469_s0 = inlined_call_operand.vmem [shape: bf16[32,256], index: 0, kind: input, shape index: {}]   ;;  %s1470_s1 = inlined_call_operand.vmem [shape: bf16[256,256], index: 1, kind: input, shape index: {}]   ;;  %s1471_s2 = inlined_call_operand.hbm [shape: f32[1,256], index: 2, kind: input, shape index: {}]   ;;  %s1472_s3 = inlined_call_operand.hbm [shape: f32[32,256], index: 3, kind: input, shape index: {}]   ;;  %s1473_s4 = inlined_call_operand.vmem [shape: f32[32,256], index: 4, kind: output, shape index: {}]  }
   0x1   :  { %1479 = sst [smem:[#allocation19_spill]] %s1469_s0 }
   0x2   :  { %1480 = sst [smem:[#allocation20_spill]] %s1470_s1 }
   0x3   :  { %9 = vsyncpa [#allocation6], 0 }
   0x4   :  { %11 = vsyncpa [#allocation6 + $0x1], 0 }
   0x5   :  { %12 = vsyncpa [#allocation8], 0 }
   0x6   :  { %14 = vsyncpa [#allocation8 + $0x1], 0  ;;  %s1205_s15 = smov 0   ;;  %s1207_s16 = smov 0  }
   0x7   :  { %s1209_s17 = smov 0   ;;  %s1211_s18 = smov 0  }
   0x8   :  { %s1213_s19 = smov 0   ;;  %s1215_s20 = smov 0  }
   0x9   :  { %s1217_s21 = smov 0   ;;  %s1219_s22 = smov 0  }
   0xa   :  { %s1221_s23 = smov 0   ;;  %s1223_s24 = smov 0  }
   0xb   :  { %s1225_s25 = smov 0   ;;  %s1227_s26 = smov 0  }
   0xc LB: > { %1481 = sst [smem:[#allocation12_spill]] %s1146_s19  ;;  %s829_s27 = sadd.s32 4294967295, %s1174_s26   ;;  %s1174_s26 = sphi %s1227_s26, %s20_s26   ;;  %s1170_s25 = sphi %s1225_s25, %s1506_s25   ;;  %s1166_s24 = sphi %s1223_s24, %s1500_s24   ;;  %s1162_s23 = sphi %s1221_s23, %s1505_s23   ;;  %s1158_s22 = sphi %s1219_s22, %s1499_s22   ;;  %s1154_s21 = sphi %s1217_s21, %s1498_s21   ;;  %s1150_s20 = sphi %s1215_s20, %s1497_s20   ;;  %s1146_s19 = sphi %s1213_s19, %s1496_s19   ;;  %s1142_s18 = sphi %s1211_s18, %s1495_s18   ;;  %s1138_s17 = sphi %s1209_s17, %s1504_s17   ;;  %s1134_s16 = sphi %s1207_s16, %s1503_s16   ;;  %s1130_s15 = sphi %s1205_s15, %s1502_s15  }
   0xd   : > { %1482 = sst [smem:[#allocation13_spill]] %s1154_s21  ;;  %s32_s28 = sadd.s32 1, %s1166_s24 }
   0xe   : > { %1483 = sst [smem:[#allocation14_spill]] %s1166_s24  ;;  %p33_p0 = scmp.ge.s32.totalorder %s32_s28, 2 }
   0xf   : > { %s35_s29 = sadd.s32 1, %s1170_s25  ;;  %s48_s30 = sadd.s32 1, %s1154_s21 }
  0x10   : > { %p55_p1 = scmp.ne.s32.totalorder %s1154_s21, %s1150_s20  ;;  %s1508_s28 = smov (%p33_p0, %s32_s28), 0 }
  0x11   : > { %1484 = sst [smem:[#allocation15_spill]] %s1508_s28  ;;  %s1510_s29 = smov (!%p33_p0, %s35_s29), %s1170_s25 }
  0x12   : > { %s44_s5 = ssub.s32 %s1166_s24, %s1508_s28  ;;  %p56_p2 = scmp.eq.s32.totalorder %s1174_s26, 0 }
  0x13   : > { %p37_p3 = scmp.ge.s32.totalorder %s1510_s29, 2  ;;  %p46_p4 = scmp.eq.s32.totalorder %s44_s5, 0 }
  0x14   : > { %p1279_p5 = por %p56_p2, %p55_p1  ;;  %s76_s7 = sadd.s32 1, %s1146_s19 }
  0x15   : > { %s1512_s29 = smov (%p37_p3, %s1510_s29), 0  ;;  %p83_p6 = scmp.ne.s32.totalorder %s1146_s19, %s1142_s18 }
  0x16   : > { %1486 = sst [smem:[#allocation16_spill]] %s1512_s29  ;;  %s72_s9 = ssub.s32 %s1170_s25, %s1512_s29 }
  0x17   : > { %s1287_s8 = scalar_select %p46_p4, %s1154_s21, %s48_s30  }
  0x18   : > { %s73_s10 = sor.u32 %s72_s9, %s44_s5  ;;  %p100_p7 = scmp.eq.s32.totalorder %s72_s9, 0 }
  0x19   : > { %1487 = sst [smem:[#allocation17_spill]] %s1287_s8  ;;  %p74_p8 = scmp.eq.s32.totalorder %s73_s10, 0 }
  0x1a   : > { %p1295_p9 = por %p83_p6, %p56_p2  ;;  %s102_s12 = sadd.s32 1, %s1138_s17 }
  0x1b   : > { %p109_p10 = scmp.ne.s32.totalorder %s1138_s17, %s1134_s16  ;;  %p115_p12 = scmp.ne.s32.totalorder %s1134_s16, %s1130_s15 }
  0x1c   : > { %s1303_s13 = scalar_select %p74_p8, %s1146_s19, %s76_s7  }
  0x1d   : > { %s1306_s14 = scalar_select %p100_p7, %s1138_s17, %s102_s12  }
  0x1e   : > { %1489 = sst [smem:[#allocation18_spill]] %s1303_s13  ;;  %p1310_p11 = por %p109_p10, %p56_p2 }
  0x1f   : > { %p116_p13 = scmp.eq.s32.totalorder %s829_s27, 0  ;;  %p169_p0 = scmp.eq.s32.totalorder %s829_s27, 3 }
  0x20   : > { %p832_p4 = scmp.ge.s32.totalorder %s1174_s26, 4 }
  0x21   : > { %p1316_p1 = por %p116_p13, %p115_p12  ;;  %p1320_p3 = por %p169_p0, %p109_p10 }
  0x22   : > { %191 = sbr.rel (%p832_p4) target bundleno = 89 (0x59), region = 16 }
  0x27   : > { %194 = sbr.rel (!%p1279_p5) target bundleno = 53 (0x35), region = 20  ;;  %s196_s7 = sand.u32 (%p1279_p5), 1, %s1154_s21  }
  0x28   : > { %s834_s15 = sshll.u32 (%p1279_p5), %s1166_s24, 2  ;;  %s833_s10 = sshll.u32 (%p1279_p5), %s196_s7, 4 }
  0x29   : > { %s1493_s0 = sld [smem:[#allocation19_spill]] (%p1279_p5)  ;;  %s198_s28 = scalar_lea.vmem (%p1279_p5), [#allocation3], %s833_s10 }
  0x2f   : > { %s203_s29 = scalar_lea.vmem %s1493_s0, %s834_s15 }
  0x30   : > { %v220_v0 = vld [vmem:[%s203_s29] sm:$0xf]  ;;  %v222_v1 = vld [vmem:[%s203_s29 + $0x8] sm:$0xf]  ;;  %v224_v2 = vld [vmem:[%s203_s29 + $0x10] sm:$0xf] }
  0x31   : > { %221 = vst [vmem:[%s198_s28] sm:$0xf] %v220_v0  ;;  %v226_v3 = vld [vmem:[%s203_s29 + $0x18] sm:$0xf] }
  0x32   : > { %223 = vst [vmem:[%s198_s28 + $0x4] sm:$0xf] %v222_v1 }
  0x33   : > { %225 = vst [vmem:[%s198_s28 + $0x8] sm:$0xf] %v224_v2 }
  0x34   : > { %227 = vst [vmem:[%s198_s28 + $0xc] sm:$0xf] %v226_v3 }
  0x35 PF: > { %259 = sbr.rel (!%p1295_p9) target bundleno = 79 (0x4f), region = 61  ;;  %s261_s6 = sand.u32 (%p1295_p9), 1, %s1146_s19  }
  0x36   : > { %s892_s7 = sshll.u32 (%p1295_p9), %s1166_s24, 5  ;;  %s835_s27 = sshll.u32 (%p1295_p9), %s261_s6, 6 }
  0x37   : > { %s266_s15 = sadd.s32 (%p1295_p9), %s1170_s25, %s892_s7  ;;  %s1494_s1 = sld [smem:[#allocation20_spill]] (%p1295_p9) }
  0x38   : > { %s838_s12 = sshll.u32 (%p1295_p9), %s266_s15, 2  ;;  %s263_s28 = scalar_lea.vmem (%p1295_p9), [#allocation4], %s835_s27 }
  0x3d   : > { %s1340_s8 = scalar_lea.vmem %s1494_s1, %s838_s12 }
  0x3e   : > { %v285_v4 = vld [vmem:[%s1340_s8] sm:$0xf]  ;;  %v287_v5 = vld [vmem:[%s1340_s8 + $0x8] sm:$0xf]  ;;  %v289_v6 = vld [vmem:[%s1340_s8 + $0x10] sm:$0xf] }
  0x3f   : > { %286 = vst [vmem:[%s263_s28] sm:$0xf] %v285_v4  ;;  %v291_v7 = vld [vmem:[%s1340_s8 + $0x18] sm:$0xf]  ;;  %v293_v8 = vld [vmem:[%s1340_s8 + $0x20] sm:$0xf] }
  0x40   : > { %288 = vst [vmem:[%s263_s28 + $0x4] sm:$0xf] %v287_v5  ;;  %v295_v9 = vld [vmem:[%s1340_s8 + $0x28] sm:$0xf]  ;;  %v297_v10 = vld [vmem:[%s1340_s8 + $0x30] sm:$0xf] }
  0x41   : > { %290 = vst [vmem:[%s263_s28 + $0x8] sm:$0xf] %v289_v6  ;;  %v299_v11 = vld [vmem:[%s1340_s8 + $0x38] sm:$0xf]  ;;  %v301_v12 = vld [vmem:[%s1340_s8 + $0x40] sm:$0xf] }
  0x42   : > { %292 = vst [vmem:[%s263_s28 + $0xc] sm:$0xf] %v291_v7  ;;  %v303_v13 = vld [vmem:[%s1340_s8 + $0x48] sm:$0xf]  ;;  %v305_v14 = vld [vmem:[%s1340_s8 + $0x50] sm:$0xf] }
  0x43   : > { %294 = vst [vmem:[%s263_s28 + $0x10] sm:$0xf] %v293_v8  ;;  %v307_v15 = vld [vmem:[%s1340_s8 + $0x58] sm:$0xf]  ;;  %v309_v16 = vld [vmem:[%s1340_s8 + $0x60] sm:$0xf] }
  0x44   : > { %296 = vst [vmem:[%s263_s28 + $0x14] sm:$0xf] %v295_v9  ;;  %v311_v17 = vld [vmem:[%s1340_s8 + $0x68] sm:$0xf]  ;;  %v313_v18 = vld [vmem:[%s1340_s8 + $0x70] sm:$0xf] }
  0x45   : > { %298 = vst [vmem:[%s263_s28 + $0x18] sm:$0xf] %v297_v10  ;;  %v315_v19 = vld [vmem:[%s1340_s8 + $0x78] sm:$0xf] }
  0x46   : > { %300 = vst [vmem:[%s263_s28 + $0x1c] sm:$0xf] %v299_v11 }
  0x47   : > { %302 = vst [vmem:[%s263_s28 + $0x20] sm:$0xf] %v301_v12 }
  0x48   : > { %304 = vst [vmem:[%s263_s28 + $0x24] sm:$0xf] %v303_v13 }
  0x49   : > { %306 = vst [vmem:[%s263_s28 + $0x28] sm:$0xf] %v305_v14 }
  0x4a   : > { %308 = vst [vmem:[%s263_s28 + $0x2c] sm:$0xf] %v307_v15 }
  0x4b   : > { %310 = vst [vmem:[%s263_s28 + $0x30] sm:$0xf] %v309_v16 }
  0x4c   : > { %312 = vst [vmem:[%s263_s28 + $0x34] sm:$0xf] %v311_v17 }
  0x4d   : > { %314 = vst [vmem:[%s263_s28 + $0x38] sm:$0xf] %v313_v18 }
  0x4e   : > { %316 = vst [vmem:[%s263_s28 + $0x3c] sm:$0xf] %v315_v19 }
  0x4f PF: > { %s373_s0 = sand.u32 1, %s1138_s17   ;;  %s379_s6 = scalar_lea.hbm %s1471_s2, %s1170_s25 }
  0x50   : > { %s381_s7 = sshll.u32 %s379_s6, 4  ;;  %s376_s27 = scalar_lea.vmem [#allocation5], %s373_s0  ;;  %s382_s7 = int_to_ptr.hbm [resolvable:$true] %s381_s7 }
  0x51   : > { %s383_s15 = sshll.u32 %s376_s27, 4  ;;  %s374_s8 = scalar_lea.sflag [#allocation6], %s373_s0  ;;  %s384_s15 = int_to_ptr.vmem [resolvable:$true] %s383_s15 }
  0x52   : > { %911 = dma.hbm_to_vmem [thread:$0]  (%p1310_p11), %s382_s7, 16, %s384_s15, %s374_s8  }
  0x53   : > { %s839_s12 = sshll.u32 %s373_s0, 5  ;;  %s840_s10 = sshll.u32 %s1170_s25, 3 }
  0x54   : > { %s401_s24 = scalar_lea.hbm %s1472_s3, %s840_s10  ;;  %s394_s21 = scalar_lea.vmem [#allocation7], %s839_s12 }
  0x55   : > { %s404_s13 = sshll.u32 %s394_s21, 4  ;;  %s402_s19 = sshll.u32 %s401_s24, 4  ;;  %s405_s13 = int_to_ptr.vmem [resolvable:$true] %s404_s13  ;;  %s403_s19 = int_to_ptr.hbm [resolvable:$true] %s402_s19 }
  0x56   : > { %s391_s29 = scalar_lea.sflag [#allocation8], %s373_s0  ;;  %s1176_s11 = smov 256  }
  0x57   : > { %s1177_s6 = smov 128   ;;  %s1178_s27 = smov 8  }
  0x58   : > { %912 = dma.hbm_to_vmem [thread:$0]  (%p1310_p11), %s403_s19, 512, %s405_s13, %s391_s29, %s1176_s11, %s1177_s6, %s1178_s27  }
  0x59 PF: > { %p841_p2 = scmp.ge.s32.totalorder %s1174_s26, 1  ;;  %p412_p5 = scmp.lt.s32.totalorder %s1174_s26, 5 }
  0x5b   : > { %p413_p6 = pnand %p841_p2, %p412_p5 }
  0x5c   : > { %s419_s1 = sand.u32 (!%p413_p6), 1, %s1150_s20   ;;  %s426_s21 = sand.u32 (!%p413_p6), 1, %s1142_s18  }
  0x5d   : > { %416 = sbr.rel (%p413_p6) target bundleno = 304 (0x130), region = 110  ;;  %s1375_s24 = sshll.u32 (!%p413_p6), %s419_s1, 4 }
  0x5e   : > { %s843_s0 = sshll.u32 (!%p413_p6), %s426_s21, 6  ;;  %s1378_s7 = sand.u32 (!%p413_p6), 1, %s1134_s16  }
  0x5f   : > { %s421_s19 = scalar_lea.vmem (!%p413_p6), [#allocation3], %s1375_s24  ;;  %s1381_s13 = scalar_lea.vmem (!%p413_p6), [#allocation4], %s843_s0 }
  0x60   : > { %s433_s30 = scalar_lea.sflag (!%p413_p6), [#allocation6], %s1378_s7  ;;  %s435_s15 = scalar_lea.vmem (!%p413_p6), [#allocation5], %s1378_s7 }
  0x62   : > { %1121 = dma.done.wait (%p1316_p1), %s433_s30, 16  }
  0x63   : > { %1123 = vsyncadd (%p1316_p1), %s433_s30, 4294967280  ;;  %s844_s18 = sshll.u32 %s1378_s7, 5  ;;  %s442_s20 = scalar_lea.sflag [#allocation8], %s1378_s7 }
  0x64   : > { %s1391_s8 = scalar_lea.vmem [#allocation7], %s844_s18 }
  0x65   : > { %1125 = dma.done.wait (%p1316_p1), %s442_s20, 512  }
  0x66   : > { %1127 = vsyncadd (%p1316_p1), %s442_s20, 4294966784  ;;  %s1397_s12 = scalar_lea.vmem [#allocation9], %s844_s18  ;;  %p846_p7 = scmp.ne.s32.totalorder %s1158_s22, 0 }
  0x68   : > { %489 = sbr.rel (%p846_p7) target bundleno = 114 (0x72), region = 130 }
  0x6d   : > { %v1179_v20 = vmov 0.0  }
  0x6e   : > { %490 = vst [vmem:[#allocation2 + $0x10] sm:$0xff] %v1179_v20 }
  0x6f   : > { %491 = vst [vmem:[#allocation2] sm:$0xff] %v1179_v20 }
  0x70   : > { %492 = vst [vmem:[#allocation2 + $0x18] sm:$0xff] %v1179_v20 }
  0x71   : > { %493 = vst [vmem:[#allocation2 + $0x8] sm:$0xff] %v1179_v20 }
  0x72 PF: > { %v902_v21 = vld [vmem:[%s1381_s13 + $0x38] sm:$0xff]  ;;  %v901_v22 = vld [vmem:[%s1381_s13 + $0x30] sm:$0xff]  ;;  %v900_v23 = vld [vmem:[%s1381_s13 + $0x28] sm:$0xff]  ;;  %p887_p8 = scmp.ne.s32.totalorder %s1158_s22, 1 }
  0x73   : > { %578 = vmatpush.bf16.msra.mxu0 %v902_v21  ;;  %903 = vmatpush.bf16.msra.mxu1 %v902_v21  ;;  %v899_v24 = vld [vmem:[%s1381_s13 + $0x20] sm:$0xff]  ;;  %v898_v25 = vld [vmem:[%s1381_s13 + $0x18] sm:$0xff]  ;;  %v897_v26 = vld [vmem:[%s1381_s13 + $0x10] sm:$0xff] }
  0x74   : > { %v896_v27 = vld [vmem:[%s1381_s13 + $0x8] sm:$0xff]  ;;  %v895_v28 = vld [vmem:[%s1381_s13] sm:$0xff] }
  0x75   : > { %v893_v29 = vld [vmem:[%s421_s19] sm:$0xff]  ;;  %v894_v30 = vld [vmem:[%s421_s19 + $0x8] sm:$0xff] }
  0x76   : > { %v494_v31 = vld [vmem:[#allocation2 + $0x10] sm:$0xff]  ;;  %v495_v37 = vld [vmem:[#allocation2] sm:$0xff] }
  0x77   : > { %579 = vmatpush.bf16.msra.mxu0 %v901_v22  ;;  %904 = vmatpush.bf16.msra.mxu1 %v901_v22  ;;  %v496_v32 = vld [vmem:[#allocation2 + $0x18] sm:$0xff] }
  0x78   : > { %v497_v38 = vld [vmem:[#allocation2 + $0x8] sm:$0xff] }
  0x7b   : > { %580 = vmatpush.bf16.msra.mxu0 %v900_v23  ;;  %905 = vmatpush.bf16.msra.mxu1 %v900_v23 }
  0x7f   : > { %581 = vmatpush.bf16.msra.mxu0 %v899_v24  ;;  %906 = vmatpush.bf16.msra.mxu1 %v899_v24 }
  0x83   : > { %582 = vmatpush.bf16.msra.mxu0 %v898_v25  ;;  %907 = vmatpush.bf16.msra.mxu1 %v898_v25 }
  0x87   : > { %583 = vmatpush.bf16.msra.mxu0 %v897_v26  ;;  %908 = vmatpush.bf16.msra.mxu1 %v897_v26 }
  0x8b   : > { %584 = vmatpush.bf16.msra.mxu0 %v896_v27  ;;  %909 = vmatpush.bf16.msra.mxu1 %v896_v27 }
  0x8f   : > { %585 = vmatpush.bf16.msra.mxu0 %v895_v28  ;;  %910 = vmatpush.bf16.msra.mxu1 %v895_v28 }
  0x92   : > { %586 = vmatmul.bf16.vlgmr.msra.gmra.mxu0 %v893_v29  ;;  %591 = vmatmul.bf16.vlgmr.msra.gmra.mxu1 %v894_v30 }
 0x10f   : > { %v587_v33 = vpop.f32.mrf.mxu0  ;;  %v592_v34 = vpop.f32.mrf.mxu1 }
 0x110   : > { %v597_v35 = vadd.f32 %v587_v33, %v494_v31  ;;  %v599_v36 = vadd.f32 %v592_v34, %v496_v32 }
 0x112   : > { %601 = vst [vmem:[#allocation2 + $0x10] sm:$0xff] %v597_v35 }
 0x113   : > { %603 = vst [vmem:[#allocation2 + $0x18] sm:$0xff] %v599_v36 }
 0x117   : > { %v589_v39 = vpop.f32.mrf.mxu0  ;;  %v594_v40 = vpop.f32.mrf.mxu1  ;;  %608 = sbr.rel (%p887_p8) target bundleno = 296 (0x128), region = 134 }
 0x118   : > { %v598_v41 = vadd.f32 %v589_v39, %v495_v37  ;;  %v600_v42 = vadd.f32 %v594_v40, %v497_v38 }
 0x11a   : > { %602 = vst [vmem:[#allocation2] sm:$0xff] %v598_v41 }
 0x11b   : > { %604 = vst [vmem:[#allocation2 + $0x8] sm:$0xff] %v600_v42 }
 0x11c   : > { %v609_v43 = vld [vmem:[#allocation2 + $0x10] sm:$0xff]  ;;  %v1015_v44 = vld [vmem:[%s435_s15] ss:$0 sm:$0xff]  ;;  %v621_v45 = vld [vmem:[%s1391_s8] sm:$0xff] }
 0x11d   : > { %v622_v47 = vld [vmem:[%s1391_s8 + $0x8] sm:$0xff]  ;;  %v617_v48 = vadd.f32 %v1015_v44, %v609_v43  ;;  %v611_v50 = vld [vmem:[#allocation2 + $0x18] sm:$0xff] }
 0x11e   : > { %v623_v51 = vld [vmem:[%s1391_s8 + $0x10] sm:$0xff]  ;;  %v619_v53 = vadd.f32 %v1015_v44, %v611_v50  ;;  %v624_v55 = vld [vmem:[%s1391_s8 + $0x18] sm:$0xff] }
 0x11f   : > { %v625_v56 = vadd.f32 %v621_v45, %v617_v48 }
 0x120   : > { %v627_v58 = vadd.f32 %v623_v51, %v619_v53 }
 0x121   : > { %v610_v46 = vld [vmem:[#allocation2] sm:$0xff]  ;;  %629 = vst [vmem:[%s1397_s12] sm:$0xff] %v625_v56 }
 0x122   : > { %v618_v49 = vadd.f32 %v1015_v44, %v610_v46  ;;  %v612_v52 = vld [vmem:[#allocation2 + $0x8] sm:$0xff]  ;;  %631 = vst [vmem:[%s1397_s12 + $0x10] sm:$0xff] %v627_v58 }
 0x123   : > { %v620_v54 = vadd.f32 %v1015_v44, %v612_v52 }
 0x124   : > { %v626_v57 = vadd.f32 %v622_v47, %v618_v49 }
 0x125   : > { %v628_v59 = vadd.f32 %v624_v55, %v620_v54 }
 0x126   : > { %630 = vst [vmem:[%s1397_s12 + $0x8] sm:$0xff] %v626_v57 }
 0x127   : > { %632 = vst [vmem:[%s1397_s12 + $0x18] sm:$0xff] %v628_v59 }
 0x128 PF: > { %639 = sbr.rel (!%p1320_p3) target bundleno = 304 (0x130), region = 138  ;;  %s889_s22 = sshll.u32 (%p1320_p3), %s1162_s23, 3  ;;  %v679_v60 = vld [vmem:[%s1397_s12] sm:$0xff] (%p1320_p3) }
 0x129   : > { %s644_s28 = scalar_lea.vmem (%p1320_p3), %s1473_s4, %s889_s22  ;;  %v683_v62 = vld [vmem:[%s1397_s12 + $0x10] sm:$0xff] (%p1320_p3) }
 0x12a   : > { %680 = vst [vmem:[%s644_s28] sm:$0xff] (%p1320_p3), %v679_v60 }
 0x12b   : > { %684 = vst [vmem:[%s644_s28 + $0x20] sm:$0xff] (%p1320_p3), %v683_v62 }
 0x12d   : > { %v681_v61 = vld [vmem:[%s1397_s12 + $0x8] sm:$0xff] }
 0x12e   : > { %v685_v63 = vld [vmem:[%s1397_s12 + $0x18] sm:$0xff]  ;;  %682 = vst [vmem:[%s644_s28 + $0x10] sm:$0xff] %v681_v61 }
 0x12f   : > { %686 = vst [vmem:[%s644_s28 + $0x30] sm:$0xff] %v685_v63 }
 0x130 PF: > { %s20_s26 = sadd.s32 1, %s1174_s26   ;;  %s1495_s18 = sld [smem:[#allocation12_spill]] }
 0x131   : > { %p17_p9 = scmp.ge.s32.totalorder %s20_s26, 6   ;;  %s1496_s19 = sld [smem:[#allocation18_spill]] }
 0x132   : > { %s1497_s20 = sld [smem:[#allocation13_spill]]  ;;  %s1502_s15 = smov %s1134_s16 }
 0x133   : > { %s1498_s21 = sld [smem:[#allocation17_spill]]  ;;  %s1503_s16 = smov %s1138_s17 }
 0x134   : > { %s1499_s22 = sld [smem:[#allocation14_spill]]  ;;  %s1504_s17 = smov %s1306_s14 }
 0x135   : > { %s1500_s24 = sld [smem:[#allocation15_spill]]  ;;  %s1505_s23 = smov %s1170_s25 }
 0x136   : > { %s1501_s9 = sld [smem:[#allocation16_spill]] }
 0x138   :  { %19 = sbr.rel (!%p17_p9) target bundleno = 12 (0xc), region = 233 }
 0x13c   : > { %s1506_s25 = smov %s1501_s9 }
 0x13d   :  { %702 = vsyncpa [#allocation6], 1 }
 0x13e   :  { %704 = vsyncpa [#allocation6 + $0x1], 1 }
 0x13f   :  { %705 = vsyncpa [#allocation8], 1 }
 0x140   :  { %707 = vsyncpa [#allocation8 + $0x1], 1 }

// kernel: self_attention_block.8
= control target key start
LH: loop header
LB: loop body
LE: loop exit
PB: predicated region body
PF: predicated region fallthrough
CT: control target
= control target key end

     0   :  { %s1278_s0 = inlined_call_operand.vmem [shape: f32[32,256], index: 0, kind: input, shape index: {}]   ;;  %s1279_s1 = inlined_call_operand.hbm [shape: bf16[256,768], index: 1, kind: input, shape index: {}]   ;;  %s1280_s2 = inlined_call_operand.hbm [shape: f32[1,768], index: 2, kind: input, shape index: {}]   ;;  %s1281_s3 = inlined_call_operand.vmem [shape: bf16[32,768], index: 3, kind: output, shape index: {}]  }
   0x1   :  { %1288 = sst [smem:[#allocation21_spill]] %s1278_s0 }
   0x2   :  { %1289 = sst [smem:[#allocation22_spill]] %s1281_s3 }
   0x3   :  { %8 = vsyncpa [#allocation5], 0 }
   0x4   :  { %10 = vsyncpa [#allocation5 + $0x1], 0 }
   0x5   :  { %11 = vsyncpa [#allocation7], 0 }
   0x6   :  { %13 = vsyncpa [#allocation7 + $0x1], 0  ;;  %s1024_s12 = smov 0   ;;  %s1026_s13 = smov 0  }
   0x7   :  { %s1028_s14 = smov 0   ;;  %s1030_s15 = smov 0  }
   0x8   :  { %s1032_s16 = smov 0   ;;  %s1034_s17 = smov 0  }
   0x9   :  { %s1036_s18 = smov 0   ;;  %s1038_s19 = smov 0  }
   0xa   :  { %s1040_s20 = smov 0   ;;  %s1042_s21 = smov 0  }
   0xb   :  { %s1044_s22 = smov 0   ;;  %s1046_s23 = smov 0  }
   0xc   :  { %s1048_s24 = smov 0  }
   0xd LB: > { %1290 = sst [smem:[#allocation11_spill]] %s970_s17  ;;  %s639_s25 = sadd.s32 4294967295, %s998_s24   ;;  %s998_s24 = sphi %s1048_s24, %s19_s24   ;;  %s994_s23 = sphi %s1046_s23, %s1326_s23   ;;  %s990_s22 = sphi %s1044_s22, %s1317_s22   ;;  %s986_s21 = sphi %s1042_s21, %s1325_s21   ;;  %s982_s20 = sphi %s1040_s20, %s1316_s20   ;;  %s978_s19 = sphi %s1038_s19, %s1315_s19   ;;  %s974_s18 = sphi %s1036_s18, %s1314_s18   ;;  %s970_s17 = sphi %s1034_s17, %s1313_s17   ;;  %s966_s16 = sphi %s1032_s16, %s1324_s16   ;;  %s962_s15 = sphi %s1030_s15, %s1323_s15   ;;  %s958_s14 = sphi %s1028_s14, %s1322_s14   ;;  %s954_s13 = sphi %s1026_s13, %s1321_s13   ;;  %s950_s12 = sphi %s1024_s12, %s1320_s12  }
   0xe   : > { %1291 = sst [smem:[#allocation12_spill]] %s978_s19  ;;  %s31_s26 = sadd.s32 1, %s990_s22 }
   0xf   : > { %1292 = sst [smem:[#allocation13_spill]] %s986_s21  ;;  %p32_p0 = scmp.ge.s32.totalorder %s31_s26, 2 }
  0x10   : > { %1293 = sst [smem:[#allocation14_spill]] %s990_s22  ;;  %s34_s27 = sadd.s32 1, %s994_s23 }
  0x11   : > { %s47_s28 = sadd.s32 1, %s978_s19  ;;  %p54_p1 = scmp.ne.s32.totalorder %s978_s19, %s974_s18 }
  0x12   : > { %s1328_s26 = smov (%p32_p0, %s31_s26), 0  ;;  %s1330_s27 = smov (!%p32_p0, %s34_s27), %s994_s23 }
  0x13   : > { %1294 = sst [smem:[#allocation15_spill]] %s1328_s26  ;;  %s43_s29 = ssub.s32 %s990_s22, %s1328_s26 }
  0x14   : > { %p55_p2 = scmp.eq.s32.totalorder %s998_s24, 0  ;;  %p36_p3 = scmp.ge.s32.totalorder %s1330_s27, 6 }
  0x15   : > { %p45_p4 = scmp.eq.s32.totalorder %s43_s29, 0  ;;  %s75_s4 = sadd.s32 1, %s970_s17 }
  0x16   : > { %p1103_p5 = por %p55_p2, %p54_p1  ;;  %s1332_s27 = smov (%p36_p3, %s1330_s27), 0 }
  0x17   : > { %1296 = sst [smem:[#allocation16_spill]] %s1332_s27  ;;  %s71_s6 = ssub.s32 %s994_s23, %s1332_s27 }
  0x18   : > { %s1111_s5 = scalar_select %p45_p4, %s978_s19, %s47_s28  }
  0x19   : > { %p82_p6 = scmp.ne.s32.totalorder %s970_s17, %s966_s16  ;;  %s72_s7 = sor.u32 %s71_s6, %s43_s29 }
  0x1a   : > { %1297 = sst [smem:[#allocation17_spill]] %s1111_s5  ;;  %p88_p7 = scmp.ne.s32.totalorder %s966_s16, %s962_s15 }
  0x1b   : > { %p73_p8 = scmp.eq.s32.totalorder %s72_s7, 0  ;;  %p1121_p9 = por %p82_p6, %p55_p2 }
  0x1c   : > { %p89_p10 = scmp.eq.s32.totalorder %s639_s25, 0  ;;  %p99_p11 = scmp.eq.s32.totalorder %s71_s6, 0 }
  0x1d   : > { %s1128_s9 = scalar_select %p73_p8, %s970_s17, %s75_s4  }
  0x1e   : > { %p1130_p12 = por %p89_p10, %p88_p7  ;;  %s101_s11 = sadd.s32 1, %s958_s14 }
  0x1f   : > { %1299 = sst [smem:[#allocation18_spill]] %s1128_s9  ;;  %p108_p13 = scmp.ne.s32.totalorder %s958_s14, %s954_s13 }
  0x20   : > { %s1136_s28 = scalar_select %p99_p11, %s958_s14, %s101_s11  }
  0x21   : > { %p114_p0 = scmp.ne.s32.totalorder %s954_s13, %s950_s12  ;;  %p140_p1 = scmp.eq.s32.totalorder %s639_s25, 11 }
  0x22   : > { %1301 = sst [smem:[#allocation19_spill]] %s1136_s28  ;;  %p1146_p3 = por %p108_p13, %p55_p2 }
  0x23   : > { %p1150_p4 = por %p114_p0, %p89_p10  ;;  %p1154_p6 = por %p140_p1, %p108_p13 }
  0x24   : > { %p642_p7 = scmp.ge.s32.totalorder %s998_s24, 12 }
  0x25   : > { %s1304_s4 = scalar_select %p1154_p6, 1, 0 }
  0x26   : > { %162 = sbr.rel (%p642_p7) target bundleno = 69 (0x45), region = 16 }
  0x27   : > { %1305 = sst [smem:[#allocation20_spill]] %s1304_s4 }
  0x2b   : > { %165 = sbr.rel (!%p1103_p5) target bundleno = 57 (0x39), region = 20  ;;  %s167_s12 = sand.u32 (%p1103_p5), 1, %s978_s19  }
  0x2c   : > { %s644_s25 = sshll.u32 (%p1103_p5), %s990_s22, 3  ;;  %s643_s6 = sshll.u32 (%p1103_p5), %s167_s12, 5 }
  0x2d   : > { %s1306_s0 = sld [smem:[#allocation21_spill]] (%p1103_p5)  ;;  %s169_s26 = scalar_lea.vmem (%p1103_p5), [#allocation3], %s643_s6 }
  0x33   : > { %s174_s27 = scalar_lea.vmem %s1306_s0, %s644_s25 }
  0x34   : > { %v209_v0 = vld [vmem:[%s174_s27] sm:$0xff]  ;;  %v211_v1 = vld [vmem:[%s174_s27 + $0x10] sm:$0xff] }
  0x35   : > { %v213_v2 = vld [vmem:[%s174_s27 + $0x20] sm:$0xff]  ;;  %210 = vst [vmem:[%s169_s26] sm:$0xff] %v209_v0  ;;  %v215_v3 = vld [vmem:[%s174_s27 + $0x30] sm:$0xff] }
  0x36   : > { %212 = vst [vmem:[%s169_s26 + $0x8] sm:$0xff] %v211_v1 }
  0x37   : > { %214 = vst [vmem:[%s169_s26 + $0x10] sm:$0xff] %v213_v2 }
  0x38   : > { %216 = vst [vmem:[%s169_s26 + $0x18] sm:$0xff] %v215_v3 }
  0x39 PF: > { %s223_s30 = sand.u32 1, %s970_s17   ;;  %s718_s12 = smul.u32 96, %s990_s22 }
  0x3a   : > { %s645_s7 = sshll.u32 %s223_s30, 6  ;;  %s247_s9 = sand.u32 1, %s958_s14  }
  0x3b   : > { %s232_s25 = sadd.s32 %s994_s23, %s718_s12  ;;  %s227_s0 = scalar_lea.vmem [#allocation4], %s645_s7 }
  0x3c   : > { %s648_s11 = sshll.u32 %s232_s25, 2  ;;  %s237_s5 = sshll.u32 %s227_s0, 4  ;;  %s238_s5 = int_to_ptr.vmem [resolvable:$true] %s237_s5 }
  0x3d   : > { %s234_s27 = scalar_lea.hbm %s1279_s1, %s648_s11  ;;  %s224_s28 = scalar_lea.sflag [#allocation5], %s223_s30 }
  0x3e   : > { %s235_s26 = sshll.u32 %s234_s27, 4  ;;  %s1000_s3 = smov 384   ;;  %s236_s26 = int_to_ptr.hbm [resolvable:$true] %s235_s26 }
  0x3f   : > { %s1001_s17 = smov 64   ;;  %s1002_s21 = smov 4  }
  0x40   : > { %719 = dma.hbm_to_vmem [thread:$0]  (%p1121_p9), %s236_s26, 1024, %s238_s5, %s224_s28, %s1000_s3, %s1001_s17, %s1002_s21  }
  0x41   : > { %s253_s7 = scalar_lea.hbm %s1280_s2, %s994_s23  ;;  %s250_s0 = scalar_lea.vmem [#allocation6], %s247_s9 }
  0x42   : > { %s257_s25 = sshll.u32 %s250_s0, 4  ;;  %s255_s4 = sshll.u32 %s253_s7, 4  ;;  %s258_s25 = int_to_ptr.vmem [resolvable:$true] %s257_s25  ;;  %s256_s4 = int_to_ptr.hbm [resolvable:$true] %s255_s4 }
  0x43   : > { %s248_s19 = scalar_lea.sflag [#allocation7], %s247_s9 }
  0x44   : > { %720 = dma.hbm_to_vmem [thread:$0]  (%p1146_p3), %s256_s4, 16, %s258_s25, %s248_s19  }
  0x45 PF: > { %p649_p2 = scmp.ge.s32.totalorder %s998_s24, 1  ;;  %p262_p5 = scmp.lt.s32.totalorder %s998_s24, 13 }
  0x47   : > { %p263_p8 = pnand %p649_p2, %p262_p5 }
  0x48   : > { %s269_s3 = sand.u32 (!%p263_p8), 1, %s974_s18   ;;  %s275_s17 = sand.u32 (!%p263_p8), 1, %s966_s16  }
  0x49   : > { %266 = sbr.rel (%p263_p8) target bundleno = 288 (0x120), region = 66  ;;  %s650_s21 = sshll.u32 (!%p263_p8), %s269_s3, 5 }
  0x4a   : > { %s651_s22 = sshll.u32 (!%p263_p8), %s275_s17, 6  ;;  %s1185_s5 = scalar_lea.vmem (!%p263_p8), [#allocation3], %s650_s21 }
  0x4b   : > { %s276_s8 = scalar_lea.sflag (!%p263_p8), [#allocation5], %s275_s17  ;;  %s1187_s9 = scalar_lea.vmem (!%p263_p8), [#allocation4], %s651_s22 }
  0x4e   : > { %941 = dma.done.wait (%p1130_p12), %s276_s8, 1024  }
  0x4f   : > { %943 = vsyncadd (%p1130_p12), %s276_s8, 4294966272  ;;  %s1194_s28 = sand.u32 1, %s954_s13  }
  0x50   : > { %s286_s18 = scalar_lea.sflag [#allocation7], %s1194_s28  ;;  %s288_s15 = scalar_lea.vmem [#allocation6], %s1194_s28 }
  0x51   : > { %945 = dma.done.wait (%p1150_p4), %s286_s18, 16  }
  0x52   : > { %947 = vsyncadd (%p1150_p4), %s286_s18, 4294967280  ;;  %s652_s4 = sshll.u32 %s1194_s28, 4  ;;  %p653_p9 = scmp.ne.s32.totalorder %s982_s20, 0 }
  0x53   : > { %s1203_s30 = scalar_lea.vmem [#allocation8], %s652_s4 }
  0x54   : > { %325 = sbr.rel (%p653_p9) target bundleno = 94 (0x5e), region = 82 }
  0x59   : > { %v1003_v4 = vmov 0.0  }
  0x5a   : > { %326 = vst [vmem:[#allocation2 + $0x10] sm:$0xff] %v1003_v4 }
  0x5b   : > { %327 = vst [vmem:[#allocation2] sm:$0xff] %v1003_v4 }
  0x5c   : > { %328 = vst [vmem:[#allocation2 + $0x18] sm:$0xff] %v1003_v4 }
  0x5d   : > { %329 = vst [vmem:[#allocation2 + $0x8] sm:$0xff] %v1003_v4 }
  0x5e PF: > { %v698_v5 = vld [vmem:[%s1187_s9 + $0x38] sm:$0xff]  ;;  %v697_v6 = vld [vmem:[%s1187_s9 + $0x30] sm:$0xff]  ;;  %v696_v7 = vld [vmem:[%s1187_s9 + $0x28] sm:$0xff]  ;;  %p686_p10 = scmp.ne.s32.totalorder %s982_s20, 1 }
  0x5f   : > { %404 = vmatpush.bf16.msra.mxu0 %v698_v5  ;;  %710 = vmatpush.bf16.msra.mxu1 %v698_v5  ;;  %v695_v8 = vld [vmem:[%s1187_s9 + $0x20] sm:$0xff]  ;;  %v694_v9 = vld [vmem:[%s1187_s9 + $0x18] sm:$0xff]  ;;  %v693_v10 = vld [vmem:[%s1187_s9 + $0x10] sm:$0xff] }
  0x60   : > { %v692_v11 = vld [vmem:[%s1187_s9 + $0x8] sm:$0xff]  ;;  %v691_v12 = vld [vmem:[%s1187_s9] sm:$0xff]  ;;  %v336_v15 = vld [vmem:[%s1185_s5 + $0x10] sm:$0xff] }
  0x61   : > { %v334_v13 = vld [vmem:[%s1185_s5] sm:$0xff]  ;;  %v335_v14 = vld [vmem:[%s1185_s5 + $0x8] sm:$0xff]  ;;  %v337_v16 = vld [vmem:[%s1185_s5 + $0x18] sm:$0xff] }
  0x62   : > { %v338_v17 = vpack.c.bf16 %v335_v14, %v334_v13  ;;  %v339_v18 = vpack.c.bf16 %v337_v16, %v336_v15  ;;  %v330_v19 = vld [vmem:[#allocation2 + $0x10] sm:$0xff]  ;;  %v331_v25 = vld [vmem:[#allocation2] sm:$0xff] }
  0x63   : > { %405 = vmatpush.bf16.msra.mxu0 %v697_v6  ;;  %711 = vmatpush.bf16.msra.mxu1 %v697_v6  ;;  %v332_v20 = vld [vmem:[#allocation2 + $0x18] sm:$0xff] }
  0x64   : > { %v333_v26 = vld [vmem:[#allocation2 + $0x8] sm:$0xff] }
  0x67   : > { %406 = vmatpush.bf16.msra.mxu0 %v696_v7  ;;  %712 = vmatpush.bf16.msra.mxu1 %v696_v7 }
  0x6b   : > { %407 = vmatpush.bf16.msra.mxu0 %v695_v8  ;;  %713 = vmatpush.bf16.msra.mxu1 %v695_v8 }
  0x6f   : > { %408 = vmatpush.bf16.msra.mxu0 %v694_v9  ;;  %714 = vmatpush.bf16.msra.mxu1 %v694_v9 }
  0x73   : > { %409 = vmatpush.bf16.msra.mxu0 %v693_v10  ;;  %715 = vmatpush.bf16.msra.mxu1 %v693_v10 }
  0x77   : > { %410 = vmatpush.bf16.msra.mxu0 %v692_v11  ;;  %716 = vmatpush.bf16.msra.mxu1 %v692_v11 }
  0x7b   : > { %411 = vmatpush.bf16.msra.mxu0 %v691_v12  ;;  %717 = vmatpush.bf16.msra.mxu1 %v691_v12 }
  0x7e   : > { %412 = vmatmul.bf16.vlgmr.msra.gmra.mxu0 %v338_v17  ;;  %417 = vmatmul.bf16.vlgmr.msra.gmra.mxu1 %v339_v18 }
  0xfb   : > { %v413_v21 = vpop.f32.mrf.mxu0  ;;  %v418_v22 = vpop.f32.mrf.mxu1 }
  0xfc   : > { %v423_v23 = vadd.f32 %v413_v21, %v330_v19  ;;  %v425_v24 = vadd.f32 %v418_v22, %v332_v20 }
  0xfe   : > { %427 = vst [vmem:[#allocation2 + $0x10] sm:$0xff] %v423_v23 }
  0xff   : > { %429 = vst [vmem:[#allocation2 + $0x18] sm:$0xff] %v425_v24 }
 0x103   : > { %v415_v27 = vpop.f32.mrf.mxu0  ;;  %v420_v28 = vpop.f32.mrf.mxu1  ;;  %434 = sbr.rel (%p686_p10) target bundleno = 276 (0x114), region = 86 }
 0x104   : > { %v424_v29 = vadd.f32 %v415_v27, %v331_v25  ;;  %v426_v30 = vadd.f32 %v420_v28, %v333_v26 }
 0x106   : > { %428 = vst [vmem:[#allocation2] sm:$0xff] %v424_v29 }
 0x107   : > { %430 = vst [vmem:[#allocation2 + $0x8] sm:$0xff] %v426_v30 }
 0x108   : > { %v435_v31 = vld [vmem:[#allocation2 + $0x10] sm:$0xff]  ;;  %v831_v33 = vld [vmem:[%s288_s15] ss:$0 sm:$0xff]  ;;  %v437_v34 = vld [vmem:[#allocation2 + $0x18] sm:$0xff] }
 0x109   : > { %v443_v36 = vadd.f32 %v831_v33, %v435_v31  ;;  %v445_v38 = vadd.f32 %v831_v33, %v437_v34 }
 0x10d   : > { %v436_v32 = vld [vmem:[#allocation2] sm:$0xff] }
 0x10e   : > { %v438_v35 = vld [vmem:[#allocation2 + $0x8] sm:$0xff]  ;;  %v444_v37 = vadd.f32 %v831_v33, %v436_v32 }
 0x10f   : > { %v446_v39 = vadd.f32 %v831_v33, %v438_v35 }
 0x110   : > { %v702_v40 = vpack.c.bf16 %v444_v37, %v443_v36 }
 0x111   : > { %v707_v41 = vpack.c.bf16 %v446_v39, %v445_v38 }
 0x112   : > { %703 = vst [vmem:[%s1203_s30] sm:$0xff] %v702_v40  }
 0x113   : > { %709 = vst [vmem:[%s1203_s30 + $0x8] sm:$0xff] %v707_v41  }
 0x114 PF: > { %461 = sbr.rel (!%p1154_p6) target bundleno = 288 (0x120), region = 90  ;;  %s1308_s10 = sld [smem:[#allocation13_spill]] (%p1154_p6) }
 0x115   : > { %s1309_s27 = sld [smem:[#allocation22_spill]] (%p1154_p6) }
 0x119   : > { %v483_v42 = vld [vmem:[%s1203_s30] sm:$0xf]  ;;  %v485_v43 = vld [vmem:[%s1203_s30 + $0x4] sm:$0xf] }
 0x11a   : > { %s688_s29 = sshll.u32 %s1308_s10, 2  ;;  %v487_v44 = vld [vmem:[%s1203_s30 + $0x8] sm:$0xf]  ;;  %v489_v45 = vld [vmem:[%s1203_s30 + $0xc] sm:$0xf] }
 0x11b   : > { %s466_s26 = scalar_lea.vmem %s1309_s27, %s688_s29 }
 0x11c   : > { %484 = vst [vmem:[%s466_s26] sm:$0xf] %v483_v42 }
 0x11d   : > { %486 = vst [vmem:[%s466_s26 + $0x18] sm:$0xf] %v485_v43 }
 0x11e   : > { %488 = vst [vmem:[%s466_s26 + $0x30] sm:$0xf] %v487_v44 }
 0x11f   : > { %490 = vst [vmem:[%s466_s26 + $0x48] sm:$0xf] %v489_v45 }
 0x120 PF: > { %s19_s24 = sadd.s32 1, %s998_s24   ;;  %s1311_s7 = sld [smem:[#allocation19_spill]] }
 0x121   : > { %p1234_p11 = scmp.ge.s32.totalorder %s19_s24, 14   ;;  %s1312_s0 = sld [smem:[#allocation11_spill]] }
 0x122   : > { %s1313_s17 = sld [smem:[#allocation18_spill]]  ;;  %s1320_s12 = smov %s954_s13 }
 0x123   : > { %s1314_s18 = sld [smem:[#allocation12_spill]]  ;;  %s1321_s13 = smov %s958_s14 }
 0x124   : > { %s1315_s19 = sld [smem:[#allocation17_spill]]  ;;  %s1323_s15 = smov %s966_s16 }
 0x125   : > { %s1316_s20 = sld [smem:[#allocation14_spill]]  ;;  %s1325_s21 = smov %s994_s23 }
 0x126   : > { %s1317_s22 = sld [smem:[#allocation15_spill]]  ;;  %s1322_s14 = smov %s1311_s7 }
 0x127   : > { %s1318_s25 = sld [smem:[#allocation16_spill]]  ;;  %s1324_s16 = smov %s1312_s0 }
 0x129   :  { %18 = sbr.rel (!%p1234_p11) target bundleno = 13 (0xd), region = 180 }
 0x12d   : > { %s1326_s23 = smov %s1318_s25 }
 0x12e   :  { %532 = vsyncpa [#allocation5], 1 }
 0x12f   :  { %534 = vsyncpa [#allocation5 + $0x1], 1 }
 0x130   :  { %535 = vsyncpa [#allocation7], 1 }
 0x131   :  { %537 = vsyncpa [#allocation7 + $0x1], 1 }

// kernel: self_attention_block.9
= control target key start
LH: loop header
LB: loop body
LE: loop exit
PB: predicated region body
PF: predicated region fallthrough
CT: control target
= control target key end

     0   :  { %s1083_s0 = inlined_call_operand.vmem [shape: bf16[2,16,768], index: 0, kind: input, shape index: {}, may-alias: {0,1,2}]   ;;  %s1084_s1 = inlined_call_operand.vmem [shape: bf16[2,16,768], index: 1, kind: input, shape index: {}, may-alias: {0,1,2}]   ;;  %s1085_s2 = inlined_call_operand.vmem [shape: bf16[2,16,768], index: 2, kind: input, shape index: {}, may-alias: {0,1,2}]   ;;  %s1086_s3 = inlined_call_operand.vmem [shape: bf16[2,16,256], index: 3, kind: output, shape index: {}]  }
   0x1   :  { %1089 = sst [smem:[#allocation9_spill]] %s1086_s3 }
   0x2   :  { %s884_s12 = smov 0   ;;  %s886_s13 = smov 0  }
   0x3   :  { %s888_s14 = smov 0   ;;  %s890_s15 = smov 0  }
   0x4   :  { %s892_s16 = smov 0   ;;  %s894_s17 = smov 0  }
   0x5   :  { %s896_s18 = smov 0   ;;  %s898_s19 = smov 0  }
   0x6   :  { %s900_s20 = smov 0   ;;  %s902_s21 = smov 0  }
   0x7   :  { %s904_s22 = smov 0  }
   0x8 LB: > { %s22_s24 = sadd.s32 1, %s854_s20  ;;  %s25_s25 = sadd.s32 1, %s858_s21  ;;  %s862_s22 = sphi %s904_s22, %s13_s22   ;;  %s858_s21 = sphi %s902_s21, %s1111_s21   ;;  %s854_s20 = sphi %s900_s20, %s1110_s20   ;;  %s850_s19 = sphi %s898_s19, %s1109_s19   ;;  %s846_s18 = sphi %s896_s18, %s1108_s18   ;;  %s842_s17 = sphi %s894_s17, %s1107_s17   ;;  %s838_s16 = sphi %s892_s16, %s1106_s16   ;;  %s834_s15 = sphi %s890_s15, %s1105_s15   ;;  %s830_s14 = sphi %s888_s14, %s1104_s14   ;;  %s826_s13 = sphi %s886_s13, %s1103_s13   ;;  %s822_s12 = sphi %s884_s12, %s1102_s12  }
   0x9   : > { %p23_p0 = scmp.ge.s32.totalorder %s22_s24, 2  ;;  %s34_s26 = sadd.s32 1, %s842_s17 }
   0xa   : > { %p41_p1 = scmp.ne.s32.totalorder %s842_s17, %s838_s16  ;;  %p42_p2 = scmp.eq.s32.totalorder %s862_s22, 0 }
   0xb   : > { %s1113_s24 = smov (%p23_p0, %s22_s24), 0  ;;  %s1115_s25 = smov (!%p23_p0, %s25_s25), %s858_s21 }
   0xc   : > { %1090 = sst [smem:[#allocation6_spill]] %s1113_s24  ;;  %s30_s27 = ssub.s32 %s854_s20, %s1113_s24 }
   0xd   : > { %p27_p3 = scmp.ge.s32.totalorder %s1115_s25, 2  ;;  %s57_s28 = sadd.s32 2, %s854_s20 }
   0xe   : > { %p957_p4 = por %p42_p2, %p41_p1  ;;  %s58_s30 = sadd.s32 2, %s1113_s24 }
   0xf   : > { %s1117_s25 = smov (%p27_p3, %s1115_s25), 0  ;;  %s60_s4 = ssub.s32 %s57_s28, %s58_s30 }
  0x10   : > { %1092 = sst [smem:[#allocation7_spill]] %s1117_s25  ;;  %s64_s5 = sadd.s32 1, %s834_s15 }
  0x11   : > { %s29_s6 = ssub.s32 %s858_s21, %s1117_s25  ;;  %p71_p5 = scmp.ne.s32.totalorder %s834_s15, %s830_s14 }
  0x12   : > { %s31_s7 = sor.u32 %s30_s27, %s29_s6  ;;  %s61_s8 = sor.u32 %s60_s4, %s29_s6 }
  0x13   : > { %p32_p6 = scmp.eq.s32.totalorder %s31_s7, 0  ;;  %p62_p7 = scmp.eq.s32.totalorder %s61_s8, 0 }
  0x14   : > { %p971_p8 = por %p71_p5, %p42_p2  ;;  %s87_s10 = sadd.s32 4, %s854_s20 }
  0x15   : > { %s977_s11 = scalar_select %p32_p6, %s842_s17, %s34_s26  }
  0x16   : > { %s980_s28 = scalar_select %p62_p7, %s834_s15, %s64_s5  }
  0x17   : > { %1094 = sst [smem:[#allocation8_spill]] %s977_s11  ;;  %s88_s30 = sadd.s32 4, %s1113_s24 }
  0x18   : > { %s94_s23 = sadd.s32 1, %s826_s13  ;;  %s90_s25 = ssub.s32 %s87_s10, %s88_s30 }
  0x19   : > { %p101_p9 = scmp.ne.s32.totalorder %s826_s13, %s822_s12  ;;  %s91_s27 = sor.u32 %s90_s25, %s29_s6 }
  0x1a   : > { %s1095_s3 = sadd.s32 4294967295, %s862_s22   ;;  %p92_p11 = scmp.eq.s32.totalorder %s91_s27, 0 }
  0x1b   : > { %p133_p10 = scmp.eq.s32.totalorder %s1095_s3, 3  ;;  %p990_p12 = por %p101_p9, %p42_p2 }
  0x1c   : > { %s1002_s26 = scalar_select %p92_p11, %s826_s13, %s94_s23  }
  0x1d   : > { %p997_p13 = por %p133_p10, %p41_p1  ;;  %p637_p0 = scmp.ge.s32.totalorder %s862_s22, 4 }
  0x1f   : > { %155 = sbr.rel (%p637_p0) target bundleno = 63 (0x3f), region = 16 }
  0x24   : > { %158 = sbr.rel (!%p957_p4) target bundleno = 45 (0x2d), region = 20  ;;  %s160_s3 = sand.u32 (%p957_p4), 1, %s842_s17  }
  0x25   : > { %s679_s25 = smul.u32 (%p957_p4), 12, %s858_s21  ;;  %s638_s5 = sshll.u32 (%p957_p4), %s160_s3, 3 }
  0x26   : > { %s162_s23 = scalar_lea.vmem (%p957_p4), [#allocation2], %s638_s5 }
  0x27   : > { %s164_s6 = sadd.s32 (%p957_p4), %s854_s20, %s679_s25 }
  0x28   : > { %s639_s8 = sshll.u32 (%p957_p4), %s164_s6, 2 }
  0x29   : > { %s166_s27 = scalar_lea.vmem %s1083_s0, %s639_s8 }
  0x2a   : > { %v183_v0 = vld [vmem:[%s166_s27] sm:$0xf]  ;;  %v185_v1 = vld [vmem:[%s166_s27 + $0x18] sm:$0xf] }
  0x2b   : > { %184 = vst [vmem:[%s162_s23] sm:$0xf] %v183_v0 }
  0x2c   : > { %186 = vst [vmem:[%s162_s23 + $0x4] sm:$0xf] %v185_v1 }
  0x2d PF: > { %214 = sbr.rel (!%p971_p8) target bundleno = 54 (0x36), region = 61  ;;  %s216_s29 = sand.u32 (%p971_p8), 1, %s834_s15  }
  0x2e   : > { %s540_s3 = smul.u32 (%p971_p8), 12, %s858_s21  ;;  %s640_s25 = sshll.u32 (%p971_p8), %s216_s29, 3 }
  0x2f   : > { %s218_s5 = scalar_lea.vmem (%p971_p8), [#allocation3], %s640_s25 }
  0x30   : > { %s541_s6 = sadd.s32 (%p971_p8), %s854_s20, %s540_s3 }
  0x31   : > { %s641_s24 = sshll.u32 (%p971_p8), %s541_s6, 2 }
  0x32   : > { %s543_s8 = scalar_lea.vmem %s1084_s1, %s641_s24 }
  0x33   : > { %v642_v2 = vld [vmem:[%s543_s8 + $0x8] sm:$0xf]  ;;  %v643_v3 = vld [vmem:[%s543_s8 + $0x20] sm:$0xf] }
  0x34   : > { %241 = vst [vmem:[%s218_s5] sm:$0xf] %v642_v2 }
  0x35   : > { %243 = vst [vmem:[%s218_s5 + $0x4] sm:$0xf] %v643_v3 }
  0x36 PF: > { %271 = sbr.rel (!%p990_p12) target bundleno = 63 (0x3f), region = 102  ;;  %s273_s9 = sand.u32 (%p990_p12), 1, %s826_s13  }
  0x37   : > { %s547_s30 = smul.u32 (%p990_p12), 12, %s858_s21  ;;  %s644_s27 = sshll.u32 (%p990_p12), %s273_s9, 3 }
  0x38   : > { %s275_s25 = scalar_lea.vmem (%p990_p12), [#allocation4], %s644_s27 }
  0x39   : > { %s548_s23 = sadd.s32 (%p990_p12), %s854_s20, %s547_s30 }
  0x3a   : > { %s645_s29 = sshll.u32 (%p990_p12), %s548_s23, 2 }
  0x3b   : > { %s550_s24 = scalar_lea.vmem %s1085_s2, %s645_s29 }
  0x3c   : > { %v646_v4 = vld [vmem:[%s550_s24 + $0x10] sm:$0xf]  ;;  %v647_v5 = vld [vmem:[%s550_s24 + $0x28] sm:$0xf] }
  0x3d   : > { %298 = vst [vmem:[%s275_s25] sm:$0xf] %v646_v4 }
  0x3e   : > { %300 = vst [vmem:[%s275_s25 + $0x4] sm:$0xf] %v647_v5 }
  0x3f PF: > { %p648_p1 = scmp.ge.s32.totalorder %s862_s22, 1  ;;  %p327_p2 = scmp.lt.s32.totalorder %s862_s22, 5 }
  0x41   : > { %p328_p3 = pnand %p648_p1, %p327_p2 }
  0x42   : > { %s341_s4 = sand.u32 (!%p328_p3), 1, %s830_s14   ;;  %s334_s6 = sand.u32 (!%p328_p3), 1, %s838_s16  }
  0x43   : > { %331 = sbr.rel (%p328_p3) target bundleno = 616 (0x268), region = 143  ;;  %s650_s10 = sshll.u32 (!%p328_p3), %s341_s4, 3 }
  0x44   : > { %s1033_s8 = sshll.u32 (!%p328_p3), %s334_s6, 3  ;;  %s343_s5 = scalar_lea.vmem (!%p328_p3), [#allocation3], %s650_s10 }
  0x45   : > { %s336_s9 = scalar_lea.vmem (!%p328_p3), [#allocation2], %s1033_s8  ;;  %s348_s14 = sand.u32 (!%p328_p3), 1, %s822_s12  }
  0x46   : > { %s651_s16 = sshll.u32 (!%p328_p3), %s348_s14, 3  ;;  %s377_s12 = scalar_lea.vmem (!%p328_p3), [#allocation5], %s1033_s8 }
  0x47   : > { %s350_s30 = scalar_lea.vmem (!%p328_p3), [#allocation4], %s651_s16 }
  0x48   : > { %v672_v6 = vld [vmem:[%s343_s5] sm:$0xff]  ;;  %v671_v7 = vld [vmem:[%s336_s9] sm:$0xff]  ;;  %vm413_vm0 = vcmask 130048   ;;  %s667_s27 = sshll.u32 (%p997_p13), %s850_s19, 2  ;;  %s1098_s24 = sld [smem:[#allocation9_spill]] (%p997_p13) }
  0x49   : > { %406 = vmatpush.bf16.xpose.msra.mxu0 %v672_v6  ;;  %v673_v22 = vld [vmem:[%s350_s30] sm:$0xff]  ;;  %s472_s23 = sadd.s32 (%p997_p13), %s846_s18, %s667_s27 }
  0x4a   : > { %453 = vmatpush.bf16.msra.mxu1 %v673_v22  ;;  %s668_s29 = sshll.u32 (%p997_p13), %s472_s23, 2 }
  0x4e   : > { %s474_s25 = scalar_lea.vmem (%p997_p13), %s1098_s24, %s668_s29 }
  0x50   : > { %407 = vmatmul.bf16.vlgmr.msra.gmra.mxu0 %v671_v7 }
  0xcd   : > { %v408_v8 = vpop.f32.mrf.mxu0 }
  0xce   : > { %v414_v9 = vsel %vm413_vm0, %v408_v8, -inf }
  0xcf   : > { %415 = vmax.xlane.f32.xlu0 %v414_v9 }
  0xd5   : > { %v410_v10 = vpop.f32.mrf.mxu0 }
  0xd6   : > { %v417_v11 = vsel %vm413_vm0, %v410_v10, -inf }
  0xd7   : > { %418 = vmax.xlane.f32.xlu0 %v417_v11 }
 0x142   : > { %v416_v12 = vpop.xlane.xlu0 %415 }
 0x143   : > { %v420_v13 = vsub.f32 %v408_v8, %v416_v12 }
 0x145   : > { %v422_v14 = vmul.f32 1.442695, %v420_v13 }
 0x147   : > { %768 = vpow2.f32 %v422_v14 }
 0x14a   : > { %v419_v15 = vpop.xlane.xlu0 %418 }
 0x14b   : > { %v421_v16 = vsub.f32 %v410_v10, %v419_v15 }
 0x14d   : > { %v769_v17 = vpop.eup %768  ;;  %v424_v18 = vmul.f32 1.442695, %v421_v16 }
 0x14e   : > { %v426_v19 = vsel %vm413_vm0, %v769_v17, 0.0 }
 0x14f   : > { %770 = vpow2.f32 %v424_v18  ;;  %427 = vadd.xlane.f32.xlu1 %v426_v19 }
 0x155   : > { %v771_v20 = vpop.eup %770 }
 0x156   : > { %v429_v21 = vsel %vm413_vm0, %v771_v20, 0.0 }
 0x157   : > { %430 = vadd.xlane.f32.xlu1 %v429_v21 }
 0x1c2   : > { %v428_v23 = vpop.xlane.xlu1 %427 }
 0x1c3   : > { %772 = vrcp.f32 %v428_v23 }
 0x1c9   : > { %v773_v25 = vpop.eup %772 }
 0x1ca   : > { %v431_v24 = vpop.xlane.xlu1 %430  ;;  %v434_v27 = vmul.f32 %v773_v25, %v769_v17 }
 0x1cb   : > { %774 = vrcp.f32 %v431_v24 }
 0x1d1   : > { %v775_v26 = vpop.eup %774 }
 0x1d2   : > { %v435_v28 = vmul.f32 %v775_v26, %v771_v20 }
 0x1d4   : > { %v436_v29 = vpack.c.bf16 %v435_v28, %v434_v27 }
 0x1d6   : > { %665 = vmatmul.msk.bf16.vlgmr.msra.gmra.mxu1 %vm413_vm0, %v436_v29 }
 0x253   : > { %v455_v30 = vpop.f32.mrf.mxu1 }
 0x25a   : > { %470 = sbr.rel (!%p997_p13) target bundleno = 616 (0x268), region = 159 }
 0x25b   : > { %v457_v31 = vpop.f32.mrf.mxu1 }
 0x25c   : > { %v677_v32 = vpack.c.bf16 %v457_v31, %v455_v30 }
 0x25e   : > { %678 = vst [vmem:[%s377_s12] sm:$0xff] %v677_v32  }
 0x265   : > { %v491_v33 = vld [vmem:[%s377_s12] sm:$0xf]  ;;  %v493_v34 = vld [vmem:[%s377_s12 + $0x4] sm:$0xf] }
 0x266   : > { %492 = vst [vmem:[%s474_s25] sm:$0xf] %v491_v33 }
 0x267   : > { %494 = vst [vmem:[%s474_s25 + $0x8] sm:$0xf] %v493_v34 }
 0x268 PF: > { %s13_s22 = sadd.s32 1, %s862_s22   ;;  %s1099_s18 = sld [smem:[#allocation8_spill]] }
 0x269   : > { %p10_p4 = scmp.ge.s32.totalorder %s13_s22, 6   ;;  %s1100_s7 = sld [smem:[#allocation6_spill]] }
 0x26a   : > { %s1101_s4 = sld [smem:[#allocation7_spill]]  ;;  %s1102_s12 = smov %s826_s13 }
 0x26b   : > { %s1103_s13 = smov %s1002_s26  ;;  %s1104_s14 = smov %s834_s15 }
 0x26c   : > { %s1105_s15 = smov %s980_s28  ;;  %s1106_s16 = smov %s842_s17 }
 0x26d   : > { %s1109_s19 = smov %s858_s21  ;;  %12 = sbr.rel (!%p10_p4) target bundleno = 8 (0x8), region = 247 }
 0x26e   : > { %s1107_s17 = smov %s1099_s18  ;;  %s1108_s18 = smov %s854_s20 }
 0x26f   : > { %s1110_s20 = smov %s1100_s7 }
 0x270   : > { %s1111_s21 = smov %s1101_s4 }

// kernel: self_attention_block.7
= control target key start
LH: loop header
LB: loop body
LE: loop exit
PB: predicated region body
PF: predicated region fallthrough
CT: control target
= control target key end

     0   :  { %8 = vsyncpa [#allocation3], 0  ;;  %s761_s0 = inlined_call_operand.hbm [shape: f32[32,256], index: 0, kind: input, shape index: {}]   ;;  %s762_s1 = inlined_call_operand.hbm [shape: f32[1,256], index: 1, kind: input, shape index: {}]   ;;  %s763_s2 = inlined_call_operand.hbm [shape: f32[1,256], index: 2, kind: input, shape index: {}]   ;;  %s764_s3 = inlined_call_operand.vmem [shape: f32[32,256], index: 3, kind: output, shape index: {}]  }
   0x1   :  { %10 = vsyncpa [#allocation3 + $0x1], 0 }
   0x2   :  { %11 = vsyncpa [#allocation5], 0  ;;  %s646_s12 = smov 0   ;;  %s648_s13 = smov 0  }
   0x3   :  { %s650_s14 = smov 0   ;;  %s652_s15 = smov 0  }
   0x4 LB: > { %s400_s16 = sadd.s32 4294967295, %s619_s15   ;;  %s666_s17 = sadd.s32 1, %s619_s15   ;;  %s619_s15 = sphi %s652_s15, %s773_s15   ;;  %s615_s14 = sphi %s650_s14, %s772_s14   ;;  %s611_s13 = sphi %s648_s13, %s771_s13   ;;  %s607_s12 = sphi %s646_s12, %s770_s12  }
   0x5   : > { %s21_s18 = ssub.s32 %s619_s15, %s666_s17  ;;  %s24_s19 = sadd.s32 1, %s615_s14 }
   0x6   : > { %p22_p0 = scmp.eq.s32.totalorder %s21_s18, 0  ;;  %p31_p1 = scmp.ne.s32.totalorder %s615_s14, %s611_s13 }
   0x7   : > { %p32_p2 = scmp.eq.s32.totalorder %s619_s15, 0  ;;  %p37_p3 = scmp.ne.s32.totalorder %s611_s13, %s607_s12 }
   0x8   : > { %s676_s20 = scalar_select %p22_p0, %s615_s14, %s24_s19  }
   0x9   : > { %p678_p4 = por %p32_p2, %p31_p1  ;;  %p684_p5 = scmp.eq.s32.totalorder %s400_s16, 0 }
   0xa   : > { %p402_p6 = scmp.ge.s32.totalorder %s619_s15, 1  ;;  %p116_p7 = scmp.lt.s32.totalorder %s619_s15, 3 }
   0xb   : > { %p692_p8 = por %p684_p5, %p37_p3  ;;  %s128_s27 = sshll.u32 %s762_s1, 4  ;;  %s129_s27 = int_to_ptr.hbm [resolvable:$true] %s128_s27 }
   0xc   : > { %p696_p9 = pnand %p402_p6, %p116_p7  ;;  %s621_s28 = smov [#allocation4]  }
   0xd   : > { %s130_s29 = sshll.u32 %s621_s28, 4  ;;  %p445_p12 = scmp.lt.s32.totalorder %s619_s15, 2  ;;  %s131_s29 = int_to_ptr.vmem [resolvable:$true] %s130_s29 }
   0xe   : > { %p432_p10 = pneg %p696_p9  ;;  %s140_s5 = sshll.u32 %s763_s2, 4  ;;  %s141_s5 = int_to_ptr.hbm [resolvable:$true] %s140_s5 }
   0xf   : > { %p713_p13 = pnand %p445_p12, %p678_p4  ;;  %s622_s7 = smov [#allocation6]  }
  0x10   : > { %p433_p11 = pnand %p432_p10, %p684_p5  ;;  %s142_s8 = sshll.u32 %s622_s7, 4  ;;  %s143_s8 = int_to_ptr.vmem [resolvable:$true] %s142_s8 }
  0x11   : > { %s153_s9 = sand.u32 1, %s615_s14   ;;  %s420_s11 = sshll.u32 %s619_s15, 5 }
  0x12   : > { %435 = dma.hbm_to_vmem [thread:$0]  (!%p433_p11), %s129_s27, 32, %s131_s29, [#allocation5]  }
  0x13   : > { %438 = dma.hbm_to_vmem [thread:$0]  (!%p433_p11), %s141_s5, 32, %s143_s8, [#allocation5]  }
  0x14   : > { %s406_s10 = sshll.u32 %s153_s9, 5  ;;  %s163_s19 = scalar_lea.hbm %s761_s0, %s420_s11 }
  0x15   : > { %s164_s25 = sshll.u32 %s163_s19, 4  ;;  %s157_s21 = scalar_lea.vmem [#allocation2], %s406_s10  ;;  %s165_s25 = int_to_ptr.hbm [resolvable:$true] %s164_s25 }
  0x16   : > { %s166_s26 = sshll.u32 %s157_s21, 4  ;;  %s154_s28 = scalar_lea.sflag [#allocation3], %s153_s9  ;;  %s167_s26 = int_to_ptr.vmem [resolvable:$true] %s166_s26 }
  0x17   : > { %s551_s27 = sshra.s32 %s165_s25, 4  ;;  %p555_p1 = pneg %p713_p13  ;;  %s552_s27 = int_to_ptr.hbm [resolvable:$true] %s551_s27 }
  0x18   : > { %s553_s29 = scalar_lea.hbm %s552_s27, 32  ;;  %s558_s5 = scalar_lea.hbm %s761_s0, 64 }
  0x19   : > { %p554_p0 = scmp.ne.s32.totalorder %s552_s27, %s553_s29  ;;  %p559_p4 = scmp.lt.s32.totalorder %s552_s27, %s761_s0 }
  0x1a   : > { %p560_p6 = scmp.lt.s32.totalorder %s558_s5, %s553_s29 }
  0x1b   : > { %p556_p2 = pnand %p555_p1, %p554_p0 }
  0x1c   : > { %p561_p7 = por %p560_p6, %p559_p4 }
  0x1d   : > { %p557_p3 = pneg %p556_p2 }
  0x1f   : > { %p562_p10 = pnand %p561_p7, %p557_p3 }
  0x21   : > { %565 = shalt.err (!%p562_p10)
}
  0x22   : > { %s623_s9 = smov 256   ;;  %s624_s10 = smov 16  }
  0x23   : > { %442 = dma.hbm_to_vmem [thread:$0]  (!%p713_p13), %s165_s25, 512, %s167_s26, %s154_s28, %s623_s9, %s623_s9, %s624_s10  }
  0x24   : > { %178 = sbr.rel (%p696_p9) target bundleno = 325 (0x145), region = 32  ;;  %s180_s11 = sand.u32 (!%p696_p9), 1, %s611_s13  }
  0x25   : > { %s411_s12 = sshll.u32 (!%p696_p9), %s180_s11, 5  ;;  %s181_s18 = scalar_lea.sflag (!%p696_p9), [#allocation3], %s180_s11 }
  0x26   : > { %s184_s19 = scalar_lea.vmem (!%p696_p9), [#allocation2], %s411_s12 }
  0x29   : > { %598 = dma.done.wait (%p692_p8), %s181_s18, 512  }
  0x2a   : > { %600 = vsyncadd (%p692_p8), %s181_s18, 4294966784 }
  0x2b   : > { %602 = dma.done.wait (%p684_p5), [#allocation5], 64  }
  0x2c   : > { %604 = vsyncadd (%p684_p5), [#allocation5], 4294967232  ;;  %v227_v0 = vld [vmem:[%s184_s19] sm:$0xff]  ;;  %v228_v1 = vld [vmem:[%s184_s19 + $0x8] sm:$0xff]  ;;  %v625_v6 = vmov 256.0   ;;  %s414_s22 = sshll.u32 %s400_s16, 1 }
  0x2d   : > { %v231_v2 = vadd.f32 %v228_v1, %v227_v0  ;;  %v229_v3 = vld [vmem:[%s184_s19 + $0x10] sm:$0xff]  ;;  %v230_v4 = vld [vmem:[%s184_s19 + $0x18] sm:$0xff]  ;;  %485 = vrcp.f32 %v625_v6  ;;  %p221_p5 = scmp.lt.s32.totalorder %s414_s22, 3  ;;  %v288_v37 = vld [vmem:[#allocation4] sm:$0x3] }
  0x2e   : > { %v234_v5 = vadd.f32 %v230_v4, %v229_v3  ;;  %v298_v40 = vld [vmem:[#allocation6] sm:$0x3]  ;;  %v290_v43 = vperm.slane %v288_v37, 0  ;;  %v291_v44 = vperm.slane %v288_v37, 1 }
  0x2f   : > { %232 = vadd.xlane.f32.xlu0 %v231_v2  ;;  %s775_s22 = smov (!%p221_p5, %s414_s22), 3  ;;  %v300_v47 = vperm.slane %v298_v40, 0  ;;  %v301_v48 = vperm.slane %v298_v40, 1 }
  0x30   : > { %s421_s15 = sshll.u32 %s775_s22, 4 }
  0x31   : > { %s225_s24 = scalar_lea.vmem %s764_s3, %s421_s15 }
  0x33   : > { %v486_v7 = vpop.eup %485 }
  0x34   : > { %v238_v8 = vmul.f32 256.0, %v486_v7  ;;  %vm242_vm0 = vweird.f32 %v486_v7 }
  0x36   : > { %v239_v9 = vsub.f32 1.0, %v238_v8 }
  0x37   : > { %235 = vadd.xlane.f32.xlu0 %v234_v5 }
  0x38   : > { %v240_v10 = vmul.f32 %v486_v7, %v239_v9 }
  0x3a   : > { %v241_v11 = vadd.f32 %v486_v7, %v240_v10 }
  0x3c   : > { %v243_v12 = vsel %vm242_vm0, %v486_v7, %v241_v11 }
  0xa2   : > { %v233_v13 = vpop.xlane.xlu0 %232 }
  0xa3   : > { %v244_v14 = vmul.f32 %v243_v12, %v233_v13 }
  0xa5   : > { %v246_v15 = vsub.f32 %v227_v0, %v244_v14  ;;  %v247_v16 = vsub.f32 %v228_v1, %v244_v14 }
  0xa7   : > { %v250_v17 = vmul.f32 %v246_v15, %v246_v15  ;;  %v251_v18 = vmul.f32 %v247_v16, %v247_v16 }
  0xa9   : > { %v254_v19 = vadd.f32 %v251_v18, %v250_v17 }
  0xaa   : > { %v236_v20 = vpop.xlane.xlu0 %235 }
  0xab   : > { %v245_v21 = vmul.f32 %v243_v12, %v236_v20  ;;  %255 = vadd.xlane.f32.xlu1 %v254_v19 }
  0xad   : > { %v248_v22 = vsub.f32 %v229_v3, %v245_v21  ;;  %v249_v23 = vsub.f32 %v230_v4, %v245_v21 }
  0xaf   : > { %v252_v24 = vmul.f32 %v248_v22, %v248_v22  ;;  %v253_v25 = vmul.f32 %v249_v23, %v249_v23 }
  0xb1   : > { %v257_v26 = vadd.f32 %v253_v25, %v252_v24 }
  0xb3   : > { %258 = vadd.xlane.f32.xlu1 %v257_v26 }
 0x11e   : > { %v256_v27 = vpop.xlane.xlu1 %255 }
 0x11f   : > { %v260_v28 = vmul.f32 %v256_v27, %v243_v12 }
 0x121   : > { %v262_v29 = vadd.f32 1e-05, %v260_v28 }
 0x123   : > { %487 = vrsqrt.f32 %v262_v29  ;;  %vm270_vm2 = vweird.f32 %v262_v29 }
 0x126   : > { %v259_v30 = vpop.xlane.xlu1 %258 }
 0x127   : > { %v261_v31 = vmul.f32 %v259_v30, %v243_v12 }
 0x129   : > { %v488_v32 = vpop.eup %487  ;;  %v263_v33 = vadd.f32 1e-05, %v261_v31 }
 0x12a   : > { %v265_v34 = vmul.f32 %v488_v32, %v262_v29  ;;  %vm271_vm1 = vweird.f32 %v488_v32 }
 0x12b   : > { %489 = vrsqrt.f32 %v263_v33  ;;  %vm272_vm3 = vmor %vm270_vm2, %vm271_vm1  ;;  %vm280_vm5 = vweird.f32 %v263_v33 }
 0x12c   : > { %v266_v35 = vmul.f32 %v488_v32, %v265_v34 }
 0x12e   : > { %v267_v36 = vmul.f32 0.5, %v266_v35 }
 0x130   : > { %v268_v38 = vsub.f32 1.5, %v267_v36 }
 0x131   : > { %v490_v39 = vpop.eup %489 }
 0x132   : > { %v269_v41 = vmul.f32 %v488_v32, %v268_v38  ;;  %v275_v42 = vmul.f32 %v490_v39, %v263_v33  ;;  %vm281_vm4 = vweird.f32 %v490_v39 }
 0x133   : > { %vm282_vm6 = vmor %vm280_vm5, %vm281_vm4 }
 0x134   : > { %v273_v45 = vsel %vm272_vm3, %v488_v32, %v269_v41  ;;  %v276_v46 = vmul.f32 %v490_v39, %v275_v42 }
 0x135   : > { %v284_v49 = vmul.f32 %v273_v45, %v246_v15  ;;  %v285_v50 = vmul.f32 %v273_v45, %v247_v16 }
 0x136   : > { %v277_v51 = vmul.f32 0.5, %v276_v46 }
 0x137   : > { %v294_v52 = vmul.f32 %v290_v43, %v284_v49  ;;  %v295_v53 = vmul.f32 %v291_v44, %v285_v50 }
 0x138   : > { %v278_v54 = vsub.f32 1.5, %v277_v51 }
 0x139   : > { %v304_v55 = vadd.f32 %v300_v47, %v294_v52  ;;  %v305_v56 = vadd.f32 %v301_v48, %v295_v53 }
 0x13a   : > { %v279_v57 = vmul.f32 %v490_v39, %v278_v54 }
 0x13b   : > { %308 = vst [vmem:[%s225_s24] sm:$0xff] %v304_v55 }
 0x13c   : > { %309 = vst [vmem:[%s225_s24 + $0x8] sm:$0xff] %v305_v56  ;;  %v283_v58 = vsel %vm282_vm6, %v490_v39, %v279_v57 }
 0x13d   : > { %v286_v59 = vmul.f32 %v283_v58, %v248_v22  ;;  %v287_v60 = vmul.f32 %v283_v58, %v249_v23 }
 0x13f   : > { %v296_v61 = vmul.f32 %v290_v43, %v286_v59  ;;  %v297_v62 = vmul.f32 %v291_v44, %v287_v60 }
 0x141   : > { %v306_v63 = vadd.f32 %v300_v47, %v296_v61  ;;  %v307_v0 = vadd.f32 %v301_v48, %v297_v62 }
 0x143   : > { %310 = vst [vmem:[%s225_s24 + $0x10] sm:$0xff] %v306_v63 }
 0x144   : > { %311 = vst [vmem:[%s225_s24 + $0x18] sm:$0xff] %v307_v0 }
 0x145 PF: > { %p14_p8 = scmp.ge.s32.totalorder %s666_s17, 4   ;;  %s770_s12 = smov %s611_s13 }
 0x146   : > { %s771_s13 = smov %s615_s14  ;;  %s772_s14 = smov %s676_s20 }
 0x147   : > { %s773_s15 = smov %s666_s17  ;;  %16 = sbr.rel (!%p14_p8) target bundleno = 4 (0x4), region = 80 }
 0x14c   :  { %336 = vsyncpa [#allocation3], 1 }
 0x14d   :  { %338 = vsyncpa [#allocation3 + $0x1], 1 }
 0x14e   :  { %339 = vsyncpa [#allocation5], 1 }

// kernel: self_attention_block.11
= control target key start
LH: loop header
LB: loop body
LE: loop exit
PB: predicated region body
PF: predicated region fallthrough
CT: control target
= control target key end

     0   :  { %s381_s12 = smov 0   ;;  %s411_s0 = inlined_call_operand.vmem [shape: f32[32,256], index: 0, kind: input, shape index: {}]   ;;  %s412_s1 = inlined_call_operand.vmem [shape: f32[1,256], index: 1, kind: input, shape index: {}]   ;;  %s413_s2 = inlined_call_operand.vmem [shape: f32[1,256], index: 2, kind: input, shape index: {}]   ;;  %s414_s3 = inlined_call_operand.vmem [shape: f32[32,256], index: 3, kind: output, shape index: {}]  }
   0x1 LB: > { %s322_s13 = sadd.s32 4294967295, %s358_s12   ;;  %p326_p0 = scmp.ge.s32.totalorder %s358_s12, 1  ;;  %s358_s12 = sphi %s381_s12, %s13_s12  }
   0x2   : > { %p139_p1 = scmp.lt.s32.totalorder %s358_s12, 3 }
   0x4   : > { %p140_p2 = pnand %p326_p0, %p139_p1 }
   0x5   : > { %s327_s14 = sshll.u32 (!%p140_p2), %s322_s13, 1 }
   0x6   : > { %143 = sbr.rel (%p140_p2) target bundleno = 295 (0x127), region = 32  ;;  %p166_p3 = scmp.lt.s32.totalorder (!%p140_p2), %s327_s14, 3 }
   0xb   : > { %s416_s14 = smov (!%p166_p3, %s327_s14), 3  ;;  %v360_v6 = vmov 256.0   ;;  %v240_v37 = vld [vmem:[%s412_s1] sm:$0x3] }
   0xc   : > { %s335_s15 = sshll.u32 %s416_s14, 4  ;;  %346 = vrcp.f32 %v360_v6  ;;  %v250_v40 = vld [vmem:[%s413_s2] sm:$0x3]  ;;  %v242_v43 = vperm.slane %v240_v37, 0  ;;  %v243_v44 = vperm.slane %v240_v37, 1 }
   0xd   : > { %s170_s18 = scalar_lea.vmem %s411_s0, %s335_s15  ;;  %v252_v47 = vperm.slane %v250_v40, 0  ;;  %v253_v48 = vperm.slane %v250_v40, 1  ;;  %s177_s25 = scalar_lea.vmem %s414_s3, %s335_s15 }
   0xe   : > { %v179_v0 = vld [vmem:[%s170_s18] sm:$0xff]  ;;  %v180_v1 = vld [vmem:[%s170_s18 + $0x8] sm:$0xff]  ;;  %v181_v3 = vld [vmem:[%s170_s18 + $0x10] sm:$0xff] }
   0xf   : > { %v183_v2 = vadd.f32 %v180_v1, %v179_v0  ;;  %v182_v4 = vld [vmem:[%s170_s18 + $0x18] sm:$0xff] }
  0x10   : > { %v186_v5 = vadd.f32 %v182_v4, %v181_v3 }
  0x11   : > { %184 = vadd.xlane.f32.xlu0 %v183_v2 }
  0x12   : > { %v347_v7 = vpop.eup %346 }
  0x13   : > { %v190_v8 = vmul.f32 256.0, %v347_v7  ;;  %vm194_vm0 = vweird.f32 %v347_v7 }
  0x15   : > { %v191_v9 = vsub.f32 1.0, %v190_v8 }
  0x17   : > { %v192_v10 = vmul.f32 %v347_v7, %v191_v9 }
  0x19   : > { %187 = vadd.xlane.f32.xlu0 %v186_v5  ;;  %v193_v11 = vadd.f32 %v347_v7, %v192_v10 }
  0x1b   : > { %v195_v12 = vsel %vm194_vm0, %v347_v7, %v193_v11 }
  0x84   : > { %v185_v13 = vpop.xlane.xlu0 %184 }
  0x85   : > { %v196_v14 = vmul.f32 %v195_v12, %v185_v13 }
  0x87   : > { %v198_v15 = vsub.f32 %v179_v0, %v196_v14  ;;  %v199_v16 = vsub.f32 %v180_v1, %v196_v14 }
  0x89   : > { %v202_v17 = vmul.f32 %v198_v15, %v198_v15  ;;  %v203_v18 = vmul.f32 %v199_v16, %v199_v16 }
  0x8b   : > { %v206_v19 = vadd.f32 %v203_v18, %v202_v17 }
  0x8c   : > { %v188_v20 = vpop.xlane.xlu0 %187 }
  0x8d   : > { %v197_v21 = vmul.f32 %v195_v12, %v188_v20  ;;  %207 = vadd.xlane.f32.xlu1 %v206_v19 }
  0x8f   : > { %v200_v22 = vsub.f32 %v181_v3, %v197_v21  ;;  %v201_v23 = vsub.f32 %v182_v4, %v197_v21 }
  0x91   : > { %v204_v24 = vmul.f32 %v200_v22, %v200_v22  ;;  %v205_v25 = vmul.f32 %v201_v23, %v201_v23 }
  0x93   : > { %v209_v26 = vadd.f32 %v205_v25, %v204_v24 }
  0x95   : > { %210 = vadd.xlane.f32.xlu1 %v209_v26 }
 0x100   : > { %v208_v27 = vpop.xlane.xlu1 %207 }
 0x101   : > { %v212_v28 = vmul.f32 %v208_v27, %v195_v12 }
 0x103   : > { %v214_v29 = vadd.f32 1e-05, %v212_v28 }
 0x105   : > { %348 = vrsqrt.f32 %v214_v29  ;;  %vm222_vm2 = vweird.f32 %v214_v29 }
 0x108   : > { %v211_v30 = vpop.xlane.xlu1 %210 }
 0x109   : > { %v213_v31 = vmul.f32 %v211_v30, %v195_v12 }
 0x10b   : > { %v349_v32 = vpop.eup %348  ;;  %v215_v33 = vadd.f32 1e-05, %v213_v31 }
 0x10c   : > { %v217_v34 = vmul.f32 %v349_v32, %v214_v29  ;;  %vm223_vm1 = vweird.f32 %v349_v32 }
 0x10d   : > { %350 = vrsqrt.f32 %v215_v33  ;;  %vm224_vm3 = vmor %vm222_vm2, %vm223_vm1  ;;  %vm232_vm5 = vweird.f32 %v215_v33 }
 0x10e   : > { %v218_v35 = vmul.f32 %v349_v32, %v217_v34 }
 0x110   : > { %v219_v36 = vmul.f32 0.5, %v218_v35 }
 0x112   : > { %v220_v38 = vsub.f32 1.5, %v219_v36 }
 0x113   : > { %v351_v39 = vpop.eup %350 }
 0x114   : > { %v221_v41 = vmul.f32 %v349_v32, %v220_v38  ;;  %v227_v42 = vmul.f32 %v351_v39, %v215_v33  ;;  %vm233_vm4 = vweird.f32 %v351_v39 }
 0x115   : > { %vm234_vm6 = vmor %vm232_vm5, %vm233_vm4 }
 0x116   : > { %v225_v45 = vsel %vm224_vm3, %v349_v32, %v221_v41  ;;  %v228_v46 = vmul.f32 %v351_v39, %v227_v42 }
 0x117   : > { %v236_v49 = vmul.f32 %v225_v45, %v198_v15  ;;  %v237_v50 = vmul.f32 %v225_v45, %v199_v16 }
 0x118   : > { %v229_v51 = vmul.f32 0.5, %v228_v46 }
 0x119   : > { %v246_v52 = vmul.f32 %v242_v43, %v236_v49  ;;  %v247_v53 = vmul.f32 %v243_v44, %v237_v50 }
 0x11a   : > { %v230_v54 = vsub.f32 1.5, %v229_v51 }
 0x11b   : > { %v256_v55 = vadd.f32 %v252_v47, %v246_v52  ;;  %v257_v56 = vadd.f32 %v253_v48, %v247_v53 }
 0x11c   : > { %v231_v57 = vmul.f32 %v351_v39, %v230_v54 }
 0x11d   : > { %260 = vst [vmem:[%s177_s25] sm:$0xff] %v256_v55 }
 0x11e   : > { %261 = vst [vmem:[%s177_s25 + $0x8] sm:$0xff] %v257_v56  ;;  %v235_v58 = vsel %vm234_vm6, %v351_v39, %v231_v57 }
 0x11f   : > { %v238_v59 = vmul.f32 %v235_v58, %v200_v22  ;;  %v239_v60 = vmul.f32 %v235_v58, %v201_v23 }
 0x121   : > { %v248_v61 = vmul.f32 %v242_v43, %v238_v59  ;;  %v249_v62 = vmul.f32 %v243_v44, %v239_v60 }
 0x123   : > { %v258_v63 = vadd.f32 %v252_v47, %v248_v61  ;;  %v259_v0 = vadd.f32 %v253_v48, %v249_v62 }
 0x125   : > { %262 = vst [vmem:[%s177_s25 + $0x10] sm:$0xff] %v258_v63 }
 0x126   : > { %263 = vst [vmem:[%s177_s25 + $0x18] sm:$0xff] %v259_v0 }
 0x127 PF: > { %s13_s12 = sadd.s32 1, %s358_s12  }
 0x128   : > { %p10_p4 = scmp.ge.s32.totalorder %s13_s12, 4  }
 0x12a   :  { %12 = sbr.rel (!%p10_p4) target bundleno = 1 (0x1), region = 62 }

// kernel: self_attention_block.13
= control target key start
LH: loop header
LB: loop body
LE: loop exit
PB: predicated region body
PF: predicated region fallthrough
CT: control target
= control target key end

     0   :  { %s1411_s0 = inlined_call_operand.vmem [shape: bf16[32,1024], index: 0, kind: input, shape index: {}]   ;;  %s1412_s1 = inlined_call_operand.vmem [shape: bf16[1024,256], index: 1, kind: input, shape index: {}]   ;;  %s1413_s2 = inlined_call_operand.vmem [shape: f32[1,256], index: 2, kind: input, shape index: {}]   ;;  %s1414_s3 = inlined_call_operand.vmem [shape: f32[32,256], index: 3, kind: input, shape index: {}]   ;;  %s1415_s4 = inlined_call_operand.hbm [shape: f32[32,256], index: 4, kind: output, shape index: {}]  }
   0x1   :  { %1419 = sst [smem:[#allocation13_spill]] %s1411_s0 }
   0x2   :  { %9 = vsyncpa [#allocation7], 0 }
   0x3   :  { %11 = vsyncpa [#allocation7 + $0x1], 0  ;;  %s1142_s15 = smov 0   ;;  %s1144_s16 = smov 0  }
   0x4   :  { %s1146_s17 = smov 0   ;;  %s1148_s18 = smov 0  }
   0x5   :  { %s1150_s19 = smov 0   ;;  %s1152_s20 = smov 0  }
   0x6   :  { %s1154_s21 = smov 0   ;;  %s1156_s22 = smov 0  }
   0x7   :  { %s1158_s23 = smov 0   ;;  %s1160_s24 = smov 0  }
   0x8   :  { %s1162_s25 = smov 0   ;;  %s1164_s26 = smov 0  }
   0x9 LB: > { %1420 = sst [smem:[#allocation9_spill]] %s1091_s21  ;;  %s795_s27 = sadd.s32 4294967295, %s1111_s26   ;;  %s1111_s26 = sphi %s1164_s26, %s17_s26   ;;  %s1107_s25 = sphi %s1162_s25, %s1442_s25   ;;  %s1103_s24 = sphi %s1160_s24, %s1441_s24   ;;  %s1099_s23 = sphi %s1158_s23, %s1440_s23   ;;  %s1095_s22 = sphi %s1156_s22, %s1439_s22   ;;  %s1091_s21 = sphi %s1154_s21, %s1431_s21   ;;  %s1087_s20 = sphi %s1152_s20, %s1430_s20   ;;  %s1083_s19 = sphi %s1150_s19, %s1438_s19   ;;  %s1079_s18 = sphi %s1148_s18, %s1437_s18   ;;  %s1075_s17 = sphi %s1146_s17, %s1436_s17   ;;  %s1071_s16 = sphi %s1144_s16, %s1435_s16   ;;  %s1067_s15 = sphi %s1142_s15, %s1434_s15  }
   0xa   : > { %s796_s28 = sadd.s32 4294967294, %s1111_s26   ;;  %s29_s29 = sadd.s32 1, %s1103_s24 }
   0xb   : > { %s32_s30 = sadd.s32 1, %s1107_s25  ;;  %p30_p0 = scmp.ge.s32.totalorder %s29_s29, 8 }
   0xc   : > { %s45_s5 = sadd.s32 1, %s1091_s21  ;;  %p52_p1 = scmp.ne.s32.totalorder %s1091_s21, %s1087_s20 }
   0xd   : > { %p53_p2 = scmp.eq.s32.totalorder %s1111_s26, 0  ;;  %s1444_s29 = smov (%p30_p0, %s29_s29), 0 }
   0xe   : > { %1421 = sst [smem:[#allocation10_spill]] %s1444_s29  ;;  %s1446_s30 = smov (!%p30_p0, %s32_s30), %s1107_s25 }
   0xf   : > { %s41_s6 = ssub.s32 %s1103_s24, %s1444_s29  ;;  %p1217_p3 = por %p53_p2, %p52_p1 }
  0x10   : > { %p34_p4 = scmp.ge.s32.totalorder %s1446_s30, 2  ;;  %p43_p5 = scmp.eq.s32.totalorder %s41_s6, 0 }
  0x11   : > { %s73_s8 = sadd.s32 1, %s1083_s19  ;;  %p80_p6 = scmp.ne.s32.totalorder %s1083_s19, %s1079_s18 }
  0x12   : > { %s1448_s30 = smov (%p34_p4, %s1446_s30), 0  ;;  %s127_s13 = sadd.s32 1, %s1075_s17 }
  0x13   : > { %1423 = sst [smem:[#allocation11_spill]] %s1448_s30  ;;  %s69_s10 = ssub.s32 %s1107_s25, %s1448_s30 }
  0x14   : > { %s1227_s9 = scalar_select %p43_p5, %s1091_s21, %s45_s5  }
  0x15   : > { %p1233_p7 = por %p80_p6, %p53_p2  ;;  %s70_s12 = sor.u32 %s69_s10, %s41_s6 }
  0x16   : > { %1424 = sst [smem:[#allocation12_spill]] %s1227_s9  ;;  %p125_p8 = scmp.eq.s32.totalorder %s69_s10, 0 }
  0x17   : > { %p71_p9 = scmp.eq.s32.totalorder %s70_s12, 0  ;;  %p134_p10 = scmp.ne.s32.totalorder %s1075_s17, %s1071_s16 }
  0x18   : > { %s1239_s14 = scalar_select %p125_p8, %s1075_s17, %s127_s13  }
  0x19   : > { %s1242_s29 = scalar_select %p71_p9, %s1083_s19, %s73_s8  }
  0x1a   : > { %p166_p11 = scmp.eq.s32.totalorder %s795_s27, 15  ;;  %p171_p12 = scmp.ne.s32.totalorder %s1071_s16, %s1067_s15 }
  0x1b   : > { %p172_p13 = scmp.eq.s32.totalorder %s796_s28, 15  ;;  %p1250_p0 = por %p134_p10, %p53_p2 }
  0x1c   : > { %p1254_p1 = por %p166_p11, %p134_p10  ;;  %p798_p5 = scmp.ge.s32.totalorder %s1111_s26, 16 }
  0x1d   : > { %p1258_p4 = por %p172_p13, %p171_p12 }
  0x1e   : > { %188 = sbr.rel (%p798_p5) target bundleno = 79 (0x4f), region = 16 }
  0x23   : > { %191 = sbr.rel (!%p1217_p3) target bundleno = 49 (0x31), region = 20  ;;  %s193_s27 = sand.u32 (%p1217_p3), 1, %s1091_s21  }
  0x24   : > { %s800_s28 = sshll.u32 (%p1217_p3), %s1103_s24, 2  ;;  %s799_s8 = sshll.u32 (%p1217_p3), %s193_s27, 4 }
  0x25   : > { %s1429_s0 = sld [smem:[#allocation13_spill]] (%p1217_p3)  ;;  %s195_s9 = scalar_lea.vmem (%p1217_p3), [#allocation3], %s799_s8 }
  0x2b   : > { %s200_s13 = scalar_lea.vmem %s1429_s0, %s800_s28 }
  0x2c   : > { %v217_v0 = vld [vmem:[%s200_s13] sm:$0xf] }
  0x2d   : > { %v219_v1 = vld [vmem:[%s200_s13 + $0x20] sm:$0xf]  ;;  %218 = vst [vmem:[%s195_s9] sm:$0xf] %v217_v0 }
  0x2e   : > { %v221_v2 = vld [vmem:[%s200_s13 + $0x40] sm:$0xf]  ;;  %220 = vst [vmem:[%s195_s9 + $0x4] sm:$0xf] %v219_v1 }
  0x2f   : > { %v223_v3 = vld [vmem:[%s200_s13 + $0x60] sm:$0xf]  ;;  %222 = vst [vmem:[%s195_s9 + $0x8] sm:$0xf] %v221_v2 }
  0x30   : > { %224 = vst [vmem:[%s195_s9 + $0xc] sm:$0xf] %v223_v3 }
  0x31 PF: > { %256 = sbr.rel (!%p1233_p7) target bundleno = 71 (0x47), region = 61  ;;  %s258_s7 = sand.u32 (%p1233_p7), 1, %s1083_s19  }
  0x32   : > { %s858_s27 = sshll.u32 (%p1233_p7), %s1103_s24, 5  ;;  %s801_s10 = sshll.u32 (%p1233_p7), %s258_s7, 6 }
  0x33   : > { %s263_s28 = sadd.s32 (%p1233_p7), %s1107_s25, %s858_s27  ;;  %s260_s9 = scalar_lea.vmem (%p1233_p7), [#allocation4], %s801_s10 }
  0x34   : > { %s804_s12 = sshll.u32 (%p1233_p7), %s263_s28, 2 }
  0x35   : > { %s1278_s21 = scalar_lea.vmem (%p1233_p7), %s1412_s1, %s804_s12 }
  0x36   : > { %v282_v4 = vld [vmem:[%s1278_s21] sm:$0xf]  ;;  %v284_v5 = vld [vmem:[%s1278_s21 + $0x8] sm:$0xf]  ;;  %v286_v6 = vld [vmem:[%s1278_s21 + $0x10] sm:$0xf] }
  0x37   : > { %283 = vst [vmem:[%s260_s9] sm:$0xf] %v282_v4  ;;  %v288_v7 = vld [vmem:[%s1278_s21 + $0x18] sm:$0xf]  ;;  %v290_v8 = vld [vmem:[%s1278_s21 + $0x20] sm:$0xf] }
  0x38   : > { %285 = vst [vmem:[%s260_s9 + $0x4] sm:$0xf] %v284_v5  ;;  %v292_v9 = vld [vmem:[%s1278_s21 + $0x28] sm:$0xf]  ;;  %v294_v10 = vld [vmem:[%s1278_s21 + $0x30] sm:$0xf] }
  0x39   : > { %287 = vst [vmem:[%s260_s9 + $0x8] sm:$0xf] %v286_v6  ;;  %v296_v11 = vld [vmem:[%s1278_s21 + $0x38] sm:$0xf]  ;;  %v298_v12 = vld [vmem:[%s1278_s21 + $0x40] sm:$0xf] }
  0x3a   : > { %289 = vst [vmem:[%s260_s9 + $0xc] sm:$0xf] %v288_v7  ;;  %v300_v13 = vld [vmem:[%s1278_s21 + $0x48] sm:$0xf]  ;;  %v302_v14 = vld [vmem:[%s1278_s21 + $0x50] sm:$0xf] }
  0x3b   : > { %291 = vst [vmem:[%s260_s9 + $0x10] sm:$0xf] %v290_v8  ;;  %v304_v15 = vld [vmem:[%s1278_s21 + $0x58] sm:$0xf]  ;;  %v306_v16 = vld [vmem:[%s1278_s21 + $0x60] sm:$0xf] }
  0x3c   : > { %293 = vst [vmem:[%s260_s9 + $0x14] sm:$0xf] %v292_v9  ;;  %v308_v17 = vld [vmem:[%s1278_s21 + $0x68] sm:$0xf]  ;;  %v310_v18 = vld [vmem:[%s1278_s21 + $0x70] sm:$0xf] }
  0x3d   : > { %295 = vst [vmem:[%s260_s9 + $0x18] sm:$0xf] %v294_v10  ;;  %v312_v19 = vld [vmem:[%s1278_s21 + $0x78] sm:$0xf] }
  0x3e   : > { %297 = vst [vmem:[%s260_s9 + $0x1c] sm:$0xf] %v296_v11 }
  0x3f   : > { %299 = vst [vmem:[%s260_s9 + $0x20] sm:$0xf] %v298_v12 }
  0x40   : > { %301 = vst [vmem:[%s260_s9 + $0x24] sm:$0xf] %v300_v13 }
  0x41   : > { %303 = vst [vmem:[%s260_s9 + $0x28] sm:$0xf] %v302_v14 }
  0x42   : > { %305 = vst [vmem:[%s260_s9 + $0x2c] sm:$0xf] %v304_v15 }
  0x43   : > { %307 = vst [vmem:[%s260_s9 + $0x30] sm:$0xf] %v306_v16 }
  0x44   : > { %309 = vst [vmem:[%s260_s9 + $0x34] sm:$0xf] %v308_v17 }
  0x45   : > { %311 = vst [vmem:[%s260_s9 + $0x38] sm:$0xf] %v310_v18 }
  0x46   : > { %313 = vst [vmem:[%s260_s9 + $0x3c] sm:$0xf] %v312_v19 }
  0x47 PF: > { %375 = sbr.rel (!%p1250_p0) target bundleno = 79 (0x4f), region = 106  ;;  %s377_s0 = sand.u32 (%p1250_p0), 1, %s1075_s17  }
  0x48   : > { %s806_s11 = sshll.u32 (%p1250_p0), %s1107_s25, 3  ;;  %s805_s13 = sshll.u32 (%p1250_p0), %s377_s0, 5 }
  0x49   : > { %s384_s10 = scalar_lea.vmem (%p1250_p0), %s1414_s3, %s806_s11  ;;  %s379_s21 = scalar_lea.vmem (%p1250_p0), [#allocation5], %s805_s13 }
  0x4a   : > { %v419_v20 = vld [vmem:[%s384_s10] sm:$0xff] (%p1250_p0)  ;;  %v421_v21 = vld [vmem:[%s384_s10 + $0x10] sm:$0xff] (%p1250_p0) }
  0x4b   : > { %v423_v22 = vld [vmem:[%s384_s10 + $0x20] sm:$0xff] (%p1250_p0)  ;;  %420 = vst [vmem:[%s379_s21] sm:$0xff] (%p1250_p0), %v419_v20  ;;  %v425_v23 = vld [vmem:[%s384_s10 + $0x30] sm:$0xff] (%p1250_p0) }
  0x4c   : > { %422 = vst [vmem:[%s379_s21 + $0x8] sm:$0xff] %v421_v21 }
  0x4d   : > { %424 = vst [vmem:[%s379_s21 + $0x10] sm:$0xff] %v423_v22 }
  0x4e   : > { %426 = vst [vmem:[%s379_s21 + $0x18] sm:$0xff] %v425_v23 }
  0x4f PF: > { %p807_p2 = scmp.ge.s32.totalorder %s1111_s26, 1  ;;  %p431_p3 = scmp.lt.s32.totalorder %s1111_s26, 17 }
  0x51   : > { %p432_p6 = pnand %p807_p2, %p431_p3 }
  0x52   : > { %s438_s5 = sand.u32 (!%p432_p6), 1, %s1087_s20   ;;  %s445_s28 = sand.u32 (!%p432_p6), 1, %s1079_s18  }
  0x53   : > { %435 = sbr.rel (%p432_p6) target bundleno = 300 (0x12c), region = 144  ;;  %s1307_s12 = sshll.u32 (!%p432_p6), %s438_s5, 4 }
  0x54   : > { %s809_s8 = sshll.u32 (!%p432_p6), %s445_s28, 6  ;;  %s452_s9 = sand.u32 (!%p432_p6), 1, %s1071_s16  }
  0x55   : > { %p490_p7 = scmp.lt.s32.totalorder (!%p432_p6), %s1099_s23, 1  ;;  %s810_s0 = sshll.u32 (!%p432_p6), %s452_s9, 5 }
  0x56   : > { %s440_s10 = scalar_lea.vmem (!%p432_p6), [#allocation3], %s1307_s12  ;;  %s1321_s21 = scalar_lea.vmem (!%p432_p6), [#allocation4], %s809_s8 }
  0x57   : > { %s1323_s20 = scalar_lea.vmem (!%p432_p6), [#allocation5], %s810_s0  ;;  %s1325_s18 = scalar_lea.vmem (!%p432_p6), [#allocation6], %s810_s0 }
  0x58   : > { %s1314_s11 = scalar_select %p490_p7, %s1099_s23, 1 }
  0x59   : > { %p812_p8 = scmp.ne.s32.totalorder %s1095_s22, 0 }
  0x5a   : > { %s492_s27 = scalar_lea.vmem %s1413_s2, %s1314_s11 }
  0x5b   : > { %498 = sbr.rel (%p812_p8) target bundleno = 101 (0x65), region = 160 }
  0x60   : > { %v1113_v24 = vmov 0.0  }
  0x61   : > { %499 = vst [vmem:[#allocation2 + $0x10] sm:$0xff] %v1113_v24 }
  0x62   : > { %500 = vst [vmem:[#allocation2] sm:$0xff] %v1113_v24 }
  0x63   : > { %501 = vst [vmem:[#allocation2 + $0x18] sm:$0xff] %v1113_v24 }
  0x64   : > { %502 = vst [vmem:[#allocation2 + $0x8] sm:$0xff] %v1113_v24 }
  0x65 PF: > { %v868_v25 = vld [vmem:[%s1321_s21 + $0x38] sm:$0xff]  ;;  %v867_v26 = vld [vmem:[%s1321_s21 + $0x30] sm:$0xff]  ;;  %v866_v27 = vld [vmem:[%s1321_s21 + $0x28] sm:$0xff]  ;;  %p853_p9 = scmp.ne.s32.totalorder %s1095_s22, 7 }
  0x66   : > { %587 = vmatpush.bf16.msra.mxu0 %v868_v25  ;;  %869 = vmatpush.bf16.msra.mxu1 %v868_v25  ;;  %v865_v28 = vld [vmem:[%s1321_s21 + $0x20] sm:$0xff]  ;;  %v864_v29 = vld [vmem:[%s1321_s21 + $0x18] sm:$0xff]  ;;  %v863_v30 = vld [vmem:[%s1321_s21 + $0x10] sm:$0xff] }
  0x67   : > { %v862_v31 = vld [vmem:[%s1321_s21 + $0x8] sm:$0xff]  ;;  %v861_v32 = vld [vmem:[%s1321_s21] sm:$0xff] }
  0x68   : > { %v859_v33 = vld [vmem:[%s440_s10] sm:$0xff]  ;;  %v860_v34 = vld [vmem:[%s440_s10 + $0x8] sm:$0xff] }
  0x69   : > { %v503_v35 = vld [vmem:[#allocation2 + $0x10] sm:$0xff]  ;;  %v504_v41 = vld [vmem:[#allocation2] sm:$0xff] }
  0x6a   : > { %588 = vmatpush.bf16.msra.mxu0 %v867_v26  ;;  %870 = vmatpush.bf16.msra.mxu1 %v867_v26  ;;  %v505_v36 = vld [vmem:[#allocation2 + $0x18] sm:$0xff] }
  0x6b   : > { %v506_v42 = vld [vmem:[#allocation2 + $0x8] sm:$0xff] }
  0x6e   : > { %589 = vmatpush.bf16.msra.mxu0 %v866_v27  ;;  %871 = vmatpush.bf16.msra.mxu1 %v866_v27 }
  0x72   : > { %590 = vmatpush.bf16.msra.mxu0 %v865_v28  ;;  %872 = vmatpush.bf16.msra.mxu1 %v865_v28 }
  0x76   : > { %591 = vmatpush.bf16.msra.mxu0 %v864_v29  ;;  %873 = vmatpush.bf16.msra.mxu1 %v864_v29 }
  0x7a   : > { %592 = vmatpush.bf16.msra.mxu0 %v863_v30  ;;  %874 = vmatpush.bf16.msra.mxu1 %v863_v30 }
  0x7e   : > { %593 = vmatpush.bf16.msra.mxu0 %v862_v31  ;;  %875 = vmatpush.bf16.msra.mxu1 %v862_v31 }
  0x82   : > { %594 = vmatpush.bf16.msra.mxu0 %v861_v32  ;;  %876 = vmatpush.bf16.msra.mxu1 %v861_v32 }
  0x85   : > { %595 = vmatmul.bf16.vlgmr.msra.gmra.mxu0 %v859_v33  ;;  %600 = vmatmul.bf16.vlgmr.msra.gmra.mxu1 %v860_v34 }
 0x102   : > { %v596_v37 = vpop.f32.mrf.mxu0  ;;  %v601_v38 = vpop.f32.mrf.mxu1 }
 0x103   : > { %v606_v39 = vadd.f32 %v596_v37, %v503_v35  ;;  %v608_v40 = vadd.f32 %v601_v38, %v505_v36 }
 0x105   : > { %610 = vst [vmem:[#allocation2 + $0x10] sm:$0xff] %v606_v39 }
 0x106   : > { %612 = vst [vmem:[#allocation2 + $0x18] sm:$0xff] %v608_v40 }
 0x10a   : > { %v598_v43 = vpop.f32.mrf.mxu0  ;;  %v603_v44 = vpop.f32.mrf.mxu1  ;;  %617 = sbr.rel (%p853_p9) target bundleno = 283 (0x11b), region = 164 }
 0x10b   : > { %v607_v45 = vadd.f32 %v598_v43, %v504_v41  ;;  %v609_v46 = vadd.f32 %v603_v44, %v506_v42 }
 0x10d   : > { %611 = vst [vmem:[#allocation2] sm:$0xff] %v607_v45 }
 0x10e   : > { %613 = vst [vmem:[#allocation2 + $0x8] sm:$0xff] %v609_v46 }
 0x10f   : > { %v618_v47 = vld [vmem:[#allocation2 + $0x10] sm:$0xff]  ;;  %v984_v48 = vld [vmem:[%s492_s27] ss:$0 sm:$0xff]  ;;  %v631_v51 = vld [vmem:[%s1323_s20 + $0x8] sm:$0xff] }
 0x110   : > { %v630_v49 = vld [vmem:[%s1323_s20] sm:$0xff]  ;;  %v626_v52 = vadd.f32 %v984_v48, %v618_v47  ;;  %v620_v54 = vld [vmem:[#allocation2 + $0x18] sm:$0xff]  ;;  %v632_v55 = vld [vmem:[%s1323_s20 + $0x10] sm:$0xff] }
 0x111   : > { %v628_v57 = vadd.f32 %v984_v48, %v620_v54  ;;  %v633_v59 = vld [vmem:[%s1323_s20 + $0x18] sm:$0xff] }
 0x112   : > { %v634_v60 = vadd.f32 %v630_v49, %v626_v52 }
 0x113   : > { %v636_v62 = vadd.f32 %v632_v55, %v628_v57 }
 0x114   : > { %v619_v50 = vld [vmem:[#allocation2] sm:$0xff]  ;;  %638 = vst [vmem:[%s1325_s18] sm:$0xff] %v634_v60 }
 0x115   : > { %v627_v53 = vadd.f32 %v984_v48, %v619_v50  ;;  %v621_v56 = vld [vmem:[#allocation2 + $0x8] sm:$0xff]  ;;  %640 = vst [vmem:[%s1325_s18 + $0x10] sm:$0xff] %v636_v62 }
 0x116   : > { %v629_v58 = vadd.f32 %v984_v48, %v621_v56 }
 0x117   : > { %v635_v61 = vadd.f32 %v631_v51, %v627_v53 }
 0x118   : > { %v637_v63 = vadd.f32 %v633_v59, %v629_v58 }
 0x119   : > { %639 = vst [vmem:[%s1325_s18 + $0x8] sm:$0xff] %v635_v61 }
 0x11a   : > { %641 = vst [vmem:[%s1325_s18 + $0x18] sm:$0xff] %v637_v63 }
 0x11b PF: > { %s855_s22 = sshll.u32 %s1099_s23, 3  ;;  %s657_s11 = sshll.u32 %s1325_s18, 4  ;;  %s658_s11 = int_to_ptr.vmem [resolvable:$true] %s657_s11 }
 0x11c   : > { %s656_s0 = scalar_lea.hbm %s1415_s4, %s855_s22  ;;  %s643_s7 = scalar_lea.sflag [#allocation7], %s452_s9 }
 0x11d   : > { %s659_s13 = sshll.u32 %s656_s0, 4  ;;  %s1005_s23 = scalar_lea.hbm %s1415_s4, 64  ;;  %s660_s13 = int_to_ptr.hbm [resolvable:$true] %s659_s13 }
 0x11e   : > { %s999_s27 = sshra.s32 %s660_s13, 4  ;;  %s1000_s27 = int_to_ptr.hbm [resolvable:$true] %s999_s27 }
 0x11f   : > { %s1001_s10 = scalar_lea.hbm %s1000_s27, 32  ;;  %p1006_p13 = scmp.lt.s32.totalorder %s1000_s27, %s1415_s4 }
 0x120   : > { %p1002_p10 = scmp.ne.s32.totalorder %s1000_s27, %s1001_s10  ;;  %p1007_p0 = scmp.lt.s32.totalorder %s1005_s23, %s1001_s10 }
 0x122   : > { %p1003_p11 = pnand %p1002_p10, %p1254_p1  ;;  %p1008_p5 = por %p1007_p0, %p1006_p13 }
 0x124   : > { %p1004_p12 = pneg %p1003_p11 }
 0x126   : > { %p1009_p2 = pnand %p1008_p5, %p1004_p12 }
 0x128   : > { %1012 = shalt.err (!%p1009_p2)
}
 0x129   : > { %s1114_s9 = smov 128   ;;  %s1115_s18 = smov 256  }
 0x12a   : > { %s1116_s22 = smov 8  }
 0x12b   : > { %877 = dma.vmem_to_hbm [thread:$0]  (%p1254_p1), %s658_s11, 512, %s660_s13, %s643_s7, %s1114_s9, %s1115_s18, %s1116_s22  }
 0x12c PF: > { %p883_p3 = scmp.ge.s32.totalorder %s1111_s26, 2  ;;  %s674_s12 = sand.u32 1, %s1067_s15  }
 0x12d   : > { %s675_s8 = scalar_lea.sflag [#allocation7], %s674_s12 }
 0x12e   : > { %p880_p6 = pnand %p883_p3, %p1258_p4 }
 0x130   : > { %p881_p7 = pneg %p880_p6 }
 0x132   : > { %1062 = dma.done.wait (%p881_p7), %s675_s8, 512  }
 0x133   : > { %1064 = vsyncadd (%p881_p7), %s675_s8, 4294966784  ;;  %s17_s26 = sadd.s32 1, %s1111_s26   ;;  %s1430_s20 = sld [smem:[#allocation9_spill]] }
 0x134   : > { %p14_p8 = scmp.ge.s32.totalorder %s17_s26, 18   ;;  %s1431_s21 = sld [smem:[#allocation12_spill]] }
 0x135   : > { %s1432_s30 = sld [smem:[#allocation10_spill]]  ;;  %s1434_s15 = smov %s1071_s16 }
 0x136   : > { %s1433_s0 = sld [smem:[#allocation11_spill]]  ;;  %s1435_s16 = smov %s1075_s17 }
 0x137   : > { %s1436_s17 = smov %s1239_s14  ;;  %s1437_s18 = smov %s1083_s19 }
 0x138   : > { %s1438_s19 = smov %s1242_s29  ;;  %s1439_s22 = smov %s1103_s24 }
 0x139   : > { %s1440_s23 = smov %s1107_s25  ;;  %16 = sbr.rel (!%p14_p8) target bundleno = 9 (0x9), region = 223 }
 0x13b   : > { %s1441_s24 = smov %s1432_s30 }
 0x13c   : > { %s1442_s25 = smov %s1433_s0 }
 0x13e   :  { %681 = vsyncpa [#allocation7], 1 }
 0x13f   :  { %683 = vsyncpa [#allocation7 + $0x1], 1 }

// kernel: self_attention_block.12
= control target key start
LH: loop header
LB: loop body
LE: loop exit
PB: predicated region body
PF: predicated region fallthrough
CT: control target
= control target key end

     0   :  { %s1213_s0 = inlined_call_operand.vmem [shape: f32[32,256], index: 0, kind: input, shape index: {}]   ;;  %s1214_s1 = inlined_call_operand.vmem [shape: bf16[256,1024], index: 1, kind: input, shape index: {}]   ;;  %s1215_s2 = inlined_call_operand.vmem [shape: f32[1,1024], index: 2, kind: input, shape index: {}]   ;;  %s1216_s3 = inlined_call_operand.vmem [shape: bf16[32,1024], index: 3, kind: output, shape index: {}]  }
   0x1   :  { %1218 = sst [smem:[#allocation7_spill]] %s1213_s0 }
   0x2   :  { %1219 = sst [smem:[#allocation8_spill]] %s1214_s1 }
   0x3   :  { %s1008_s12 = smov 0   ;;  %s1010_s13 = smov 0  }
   0x4   :  { %s1012_s14 = smov 0   ;;  %s1014_s15 = smov 0  }
   0x5   :  { %s1016_s16 = smov 0   ;;  %s1018_s17 = smov 0  }
   0x6   :  { %s1020_s18 = smov 0   ;;  %s1022_s19 = smov 0  }
   0x7   :  { %s1024_s20 = smov 0   ;;  %s1026_s21 = smov 0  }
   0x8   :  { %s1028_s22 = smov 0  }
   0x9 LB: > { %s721_s23 = sadd.s32 4294967295, %s985_s22   ;;  %s25_s24 = sadd.s32 1, %s977_s20  ;;  %s985_s22 = sphi %s1028_s22, %s13_s22   ;;  %s981_s21 = sphi %s1026_s21, %s1236_s21   ;;  %s977_s20 = sphi %s1024_s20, %s1235_s20   ;;  %s973_s19 = sphi %s1022_s19, %s1234_s19   ;;  %s969_s18 = sphi %s1020_s18, %s1233_s18   ;;  %s965_s17 = sphi %s1018_s17, %s1232_s17   ;;  %s961_s16 = sphi %s1016_s16, %s1231_s16   ;;  %s957_s15 = sphi %s1014_s15, %s1230_s15   ;;  %s953_s14 = sphi %s1012_s14, %s1229_s14   ;;  %s949_s13 = sphi %s1010_s13, %s1228_s13   ;;  %s945_s12 = sphi %s1008_s12, %s1227_s12  }
   0xa   : > { %p26_p0 = scmp.ge.s32.totalorder %s25_s24, 2  ;;  %s28_s25 = sadd.s32 1, %s981_s21 }
   0xb   : > { %s41_s26 = sadd.s32 1, %s965_s17  ;;  %p48_p1 = scmp.ne.s32.totalorder %s965_s17, %s961_s16 }
   0xc   : > { %s1238_s24 = smov (%p26_p0, %s25_s24), 0  ;;  %s1240_s25 = smov (!%p26_p0, %s28_s25), %s981_s21 }
   0xd   : > { %s37_s27 = ssub.s32 %s977_s20, %s1238_s24  ;;  %p49_p2 = scmp.eq.s32.totalorder %s985_s22, 0 }
   0xe   : > { %p30_p3 = scmp.ge.s32.totalorder %s1240_s25, 8  ;;  %p39_p4 = scmp.eq.s32.totalorder %s37_s27, 0 }
   0xf   : > { %p1075_p5 = por %p49_p2, %p48_p1  ;;  %s69_s29 = sadd.s32 1, %s957_s15 }
  0x10   : > { %s1242_s25 = smov (%p30_p3, %s1240_s25), 0  ;;  %p76_p6 = scmp.ne.s32.totalorder %s957_s15, %s953_s14 }
  0x11   : > { %1221 = sst [smem:[#allocation6_spill]] %s1242_s25  ;;  %s65_s4 = ssub.s32 %s981_s21, %s1242_s25 }
  0x12   : > { %s1083_s30 = scalar_select %p39_p4, %s965_s17, %s41_s26  }
  0x13   : > { %s66_s5 = sor.u32 %s65_s4, %s37_s27  ;;  %p121_p7 = scmp.eq.s32.totalorder %s65_s4, 0 }
  0x14   : > { %p67_p8 = scmp.eq.s32.totalorder %s66_s5, 0  ;;  %p1089_p9 = por %p76_p6, %p49_p2 }
  0x15   : > { %s123_s7 = sadd.s32 1, %s949_s13  ;;  %p133_p10 = scmp.ne.s32.totalorder %s949_s13, %s945_s12 }
  0x16   : > { %s1097_s8 = scalar_select %p67_p8, %s957_s15, %s69_s29  }
  0x17   : > { %s1100_s9 = scalar_select %p121_p7, %s949_s13, %s123_s7  }
  0x18   : > { %p134_p11 = scmp.eq.s32.totalorder %s721_s23, 15  ;;  %p724_p13 = scmp.ge.s32.totalorder %s985_s22, 16 }
  0x1a   : > { %p1102_p12 = por %p134_p11, %p133_p10  ;;  %156 = sbr.rel (%p724_p13) target bundleno = 71 (0x47), region = 16 }
  0x1f   : > { %159 = sbr.rel (!%p1075_p5) target bundleno = 45 (0x2d), region = 20  ;;  %s161_s11 = sand.u32 (%p1075_p5), 1, %s965_s17  }
  0x20   : > { %s726_s26 = sshll.u32 (%p1075_p5), %s977_s20, 3  ;;  %s725_s27 = sshll.u32 (%p1075_p5), %s161_s11, 5 }
  0x21   : > { %s1224_s0 = sld [smem:[#allocation7_spill]] (%p1075_p5)  ;;  %s163_s23 = scalar_lea.vmem (%p1075_p5), [#allocation3], %s725_s27 }
  0x27   : > { %s168_s5 = scalar_lea.vmem %s1224_s0, %s726_s26 }
  0x28   : > { %v203_v0 = vld [vmem:[%s168_s5] sm:$0xff]  ;;  %v205_v1 = vld [vmem:[%s168_s5 + $0x10] sm:$0xff] }
  0x29   : > { %v207_v2 = vld [vmem:[%s168_s5 + $0x20] sm:$0xff]  ;;  %204 = vst [vmem:[%s163_s23] sm:$0xff] %v203_v0  ;;  %v209_v3 = vld [vmem:[%s168_s5 + $0x30] sm:$0xff] }
  0x2a   : > { %206 = vst [vmem:[%s163_s23 + $0x8] sm:$0xff] %v205_v1 }
  0x2b   : > { %208 = vst [vmem:[%s163_s23 + $0x10] sm:$0xff] %v207_v2 }
  0x2c   : > { %210 = vst [vmem:[%s163_s23 + $0x18] sm:$0xff] %v209_v3 }
  0x2d PF: > { %216 = sbr.rel (!%p1089_p9) target bundleno = 71 (0x47), region = 58  ;;  %s218_s28 = sand.u32 (%p1089_p9), 1, %s957_s15  }
  0x2e   : > { %s773_s7 = sshll.u32 (%p1089_p9), %s977_s20, 7  ;;  %s727_s11 = sshll.u32 (%p1089_p9), %s218_s28, 6 }
  0x2f   : > { %s223_s26 = sadd.s32 (%p1089_p9), %s981_s21, %s773_s7  ;;  %s1225_s1 = sld [smem:[#allocation8_spill]] (%p1089_p9) }
  0x30   : > { %s730_s29 = sshll.u32 (%p1089_p9), %s223_s26, 2  ;;  %s220_s6 = scalar_lea.vmem (%p1089_p9), [#allocation4], %s727_s11 }
  0x35   : > { %s1122_s27 = scalar_lea.vmem %s1225_s1, %s730_s29 }
  0x36   : > { %v242_v4 = vld [vmem:[%s1122_s27] sm:$0xf] }
  0x37   : > { %v244_v5 = vld [vmem:[%s1122_s27 + $0x20] sm:$0xf]  ;;  %243 = vst [vmem:[%s220_s6] sm:$0xf] %v242_v4 }
  0x38   : > { %v246_v6 = vld [vmem:[%s1122_s27 + $0x40] sm:$0xf]  ;;  %245 = vst [vmem:[%s220_s6 + $0x4] sm:$0xf] %v244_v5 }
  0x39   : > { %v248_v7 = vld [vmem:[%s1122_s27 + $0x60] sm:$0xf]  ;;  %247 = vst [vmem:[%s220_s6 + $0x8] sm:$0xf] %v246_v6 }
  0x3a   : > { %v250_v8 = vld [vmem:[%s1122_s27 + $0x80] sm:$0xf]  ;;  %249 = vst [vmem:[%s220_s6 + $0xc] sm:$0xf] %v248_v7 }
  0x3b   : > { %v252_v9 = vld [vmem:[%s1122_s27 + $0xa0] sm:$0xf]  ;;  %251 = vst [vmem:[%s220_s6 + $0x10] sm:$0xf] %v250_v8 }
  0x3c   : > { %v254_v10 = vld [vmem:[%s1122_s27 + $0xc0] sm:$0xf]  ;;  %253 = vst [vmem:[%s220_s6 + $0x14] sm:$0xf] %v252_v9 }
  0x3d   : > { %v256_v11 = vld [vmem:[%s1122_s27 + $0xe0] sm:$0xf]  ;;  %255 = vst [vmem:[%s220_s6 + $0x18] sm:$0xf] %v254_v10 }
  0x3e   : > { %v258_v12 = vld [vmem:[%s1122_s27 + $0x100] sm:$0xf]  ;;  %257 = vst [vmem:[%s220_s6 + $0x1c] sm:$0xf] %v256_v11 }
  0x3f   : > { %v260_v13 = vld [vmem:[%s1122_s27 + $0x120] sm:$0xf]  ;;  %259 = vst [vmem:[%s220_s6 + $0x20] sm:$0xf] %v258_v12 }
  0x40   : > { %v262_v14 = vld [vmem:[%s1122_s27 + $0x140] sm:$0xf]  ;;  %261 = vst [vmem:[%s220_s6 + $0x24] sm:$0xf] %v260_v13 }
  0x41   : > { %v264_v15 = vld [vmem:[%s1122_s27 + $0x160] sm:$0xf]  ;;  %263 = vst [vmem:[%s220_s6 + $0x28] sm:$0xf] %v262_v14 }
  0x42   : > { %v266_v16 = vld [vmem:[%s1122_s27 + $0x180] sm:$0xf]  ;;  %265 = vst [vmem:[%s220_s6 + $0x2c] sm:$0xf] %v264_v15 }
  0x43   : > { %v268_v17 = vld [vmem:[%s1122_s27 + $0x1a0] sm:$0xf]  ;;  %267 = vst [vmem:[%s220_s6 + $0x30] sm:$0xf] %v266_v16 }
  0x44   : > { %v270_v18 = vld [vmem:[%s1122_s27 + $0x1c0] sm:$0xf]  ;;  %269 = vst [vmem:[%s220_s6 + $0x34] sm:$0xf] %v268_v17 }
  0x45   : > { %v272_v19 = vld [vmem:[%s1122_s27 + $0x1e0] sm:$0xf]  ;;  %271 = vst [vmem:[%s220_s6 + $0x38] sm:$0xf] %v270_v18 }
  0x46   : > { %273 = vst [vmem:[%s220_s6 + $0x3c] sm:$0xf] %v272_v19 }
  0x47 PF: > { %p731_p0 = scmp.ge.s32.totalorder %s985_s22, 1  ;;  %p334_p1 = scmp.lt.s32.totalorder %s985_s22, 17 }
  0x49   : > { %p335_p2 = pnand %p731_p0, %p334_p1 }
  0x4a   : > { %s341_s0 = sand.u32 (!%p335_p2), 1, %s961_s16   ;;  %s348_s5 = sand.u32 (!%p335_p2), 1, %s953_s14  }
  0x4b   : > { %338 = sbr.rel (%p335_p2) target bundleno = 304 (0x130), region = 103  ;;  %s732_s23 = sshll.u32 (!%p335_p2), %s341_s0, 5 }
  0x4c   : > { %s733_s28 = sshll.u32 (!%p335_p2), %s348_s5, 6  ;;  %s374_s7 = sand.u32 (!%p335_p2), 1, %s945_s12  }
  0x4d   : > { %p379_p3 = scmp.lt.s32.totalorder (!%p335_p2), %s973_s19, 7  ;;  %s734_s11 = sshll.u32 (!%p335_p2), %s374_s7, 4 }
  0x4e   : > { %s1153_s6 = scalar_lea.vmem (!%p335_p2), [#allocation3], %s732_s23  ;;  %s350_s1 = scalar_lea.vmem (!%p335_p2), [#allocation4], %s733_s28 }
  0x4f   : > { %s1155_s25 = scalar_lea.vmem (!%p335_p2), [#allocation5], %s734_s11  ;;  %p735_p4 = scmp.ne.s32.totalorder (!%p335_p2), %s969_s18, 0 }
  0x50   : > { %s1147_s26 = scalar_select %p379_p3, %s973_s19, 7 }
  0x51   : > { %386 = sbr.rel (%p735_p4) target bundleno = 91 (0x5b), region = 115 }
  0x52   : > { %s381_s27 = scalar_lea.vmem %s1215_s2, %s1147_s26 }
  0x56   : > { %v987_v20 = vmov 0.0  }
  0x57   : > { %387 = vst [vmem:[#allocation2 + $0x10] sm:$0xff] %v987_v20 }
  0x58   : > { %388 = vst [vmem:[#allocation2] sm:$0xff] %v987_v20 }
  0x59   : > { %389 = vst [vmem:[#allocation2 + $0x18] sm:$0xff] %v987_v20 }
  0x5a   : > { %390 = vst [vmem:[#allocation2 + $0x8] sm:$0xff] %v987_v20 }
  0x5b PF: > { %v781_v21 = vld [vmem:[%s350_s1 + $0x38] sm:$0xff]  ;;  %v780_v22 = vld [vmem:[%s350_s1 + $0x30] sm:$0xff]  ;;  %v779_v23 = vld [vmem:[%s350_s1 + $0x28] sm:$0xff]  ;;  %p768_p5 = scmp.ne.s32.totalorder %s969_s18, 1 }
  0x5c   : > { %465 = vmatpush.bf16.msra.mxu0 %v781_v21  ;;  %793 = vmatpush.bf16.msra.mxu1 %v781_v21  ;;  %v778_v24 = vld [vmem:[%s350_s1 + $0x20] sm:$0xff]  ;;  %v777_v25 = vld [vmem:[%s350_s1 + $0x18] sm:$0xff]  ;;  %v776_v26 = vld [vmem:[%s350_s1 + $0x10] sm:$0xff] }
  0x5d   : > { %v775_v27 = vld [vmem:[%s350_s1 + $0x8] sm:$0xff]  ;;  %v774_v28 = vld [vmem:[%s350_s1] sm:$0xff]  ;;  %v397_v31 = vld [vmem:[%s1153_s6 + $0x10] sm:$0xff] }
  0x5e   : > { %v395_v29 = vld [vmem:[%s1153_s6] sm:$0xff]  ;;  %v396_v30 = vld [vmem:[%s1153_s6 + $0x8] sm:$0xff]  ;;  %v398_v32 = vld [vmem:[%s1153_s6 + $0x18] sm:$0xff] }
  0x5f   : > { %v399_v33 = vpack.c.bf16 %v396_v30, %v395_v29  ;;  %v400_v34 = vpack.c.bf16 %v398_v32, %v397_v31  ;;  %v391_v35 = vld [vmem:[#allocation2 + $0x10] sm:$0xff]  ;;  %v392_v41 = vld [vmem:[#allocation2] sm:$0xff] }
  0x60   : > { %466 = vmatpush.bf16.msra.mxu0 %v780_v22  ;;  %794 = vmatpush.bf16.msra.mxu1 %v780_v22  ;;  %v393_v36 = vld [vmem:[#allocation2 + $0x18] sm:$0xff] }
  0x61   : > { %v394_v42 = vld [vmem:[#allocation2 + $0x8] sm:$0xff] }
  0x64   : > { %467 = vmatpush.bf16.msra.mxu0 %v779_v23  ;;  %795 = vmatpush.bf16.msra.mxu1 %v779_v23 }
  0x68   : > { %468 = vmatpush.bf16.msra.mxu0 %v778_v24  ;;  %796 = vmatpush.bf16.msra.mxu1 %v778_v24 }
  0x6c   : > { %469 = vmatpush.bf16.msra.mxu0 %v777_v25  ;;  %797 = vmatpush.bf16.msra.mxu1 %v777_v25 }
  0x70   : > { %470 = vmatpush.bf16.msra.mxu0 %v776_v26  ;;  %798 = vmatpush.bf16.msra.mxu1 %v776_v26 }
  0x74   : > { %471 = vmatpush.bf16.msra.mxu0 %v775_v27  ;;  %799 = vmatpush.bf16.msra.mxu1 %v775_v27 }
  0x78   : > { %472 = vmatpush.bf16.msra.mxu0 %v774_v28  ;;  %800 = vmatpush.bf16.msra.mxu1 %v774_v28 }
  0x7b   : > { %473 = vmatmul.bf16.vlgmr.msra.gmra.mxu0 %v399_v33  ;;  %478 = vmatmul.bf16.vlgmr.msra.gmra.mxu1 %v400_v34 }
  0xf8   : > { %v474_v37 = vpop.f32.mrf.mxu0  ;;  %v479_v38 = vpop.f32.mrf.mxu1 }
  0xf9   : > { %v484_v39 = vadd.f32 %v474_v37, %v391_v35  ;;  %v486_v40 = vadd.f32 %v479_v38, %v393_v36 }
  0xfb   : > { %488 = vst [vmem:[#allocation2 + $0x10] sm:$0xff] %v484_v39 }
  0xfc   : > { %490 = vst [vmem:[#allocation2 + $0x18] sm:$0xff] %v486_v40 }
 0x100   : > { %v476_v43 = vpop.f32.mrf.mxu0  ;;  %v481_v44 = vpop.f32.mrf.mxu1  ;;  %495 = sbr.rel (%p768_p5) target bundleno = 295 (0x127), region = 119 }
 0x101   : > { %v485_v45 = vadd.f32 %v476_v43, %v392_v41  ;;  %v487_v46 = vadd.f32 %v481_v44, %v394_v42 }
 0x103   : > { %489 = vst [vmem:[#allocation2] sm:$0xff] %v485_v45 }
 0x104   : > { %491 = vst [vmem:[#allocation2 + $0x8] sm:$0xff] %v487_v46 }
 0x105   : > { %v496_v47 = vld [vmem:[#allocation2 + $0x10] sm:$0xff]  ;;  %v890_v49 = vld [vmem:[%s381_s27] ss:$0 sm:$0xff]  ;;  %v498_v50 = vld [vmem:[#allocation2 + $0x18] sm:$0xff] }
 0x106   : > { %v504_v52 = vadd.f32 %v890_v49, %v496_v47  ;;  %v506_v54 = vadd.f32 %v890_v49, %v498_v50 }
 0x108   : > { %v512_v56 = vmul.f32 0.044715, %v504_v52  ;;  %v514_v58 = vmul.f32 0.044715, %v506_v54  ;;  %v508_v12 = vmul.f32 0.5, %v504_v52  ;;  %v510_v17 = vmul.f32 0.5, %v506_v54 }
 0x10a   : > { %v497_v48 = vld [vmem:[#allocation2] sm:$0xff]  ;;  %v516_v60 = vmul.f32 %v512_v56, %v504_v52  ;;  %v518_v62 = vmul.f32 %v514_v58, %v506_v54 }
 0x10b   : > { %v499_v51 = vld [vmem:[#allocation2 + $0x8] sm:$0xff]  ;;  %v505_v53 = vadd.f32 %v890_v49, %v497_v48 }
 0x10c   : > { %v507_v55 = vadd.f32 %v890_v49, %v499_v51  ;;  %v520_v0 = vmul.f32 %v516_v60, %v504_v52  ;;  %v522_v2 = vmul.f32 %v518_v62, %v506_v54 }
 0x10d   : > { %v513_v57 = vmul.f32 0.044715, %v505_v53  ;;  %v509_v14 = vmul.f32 0.5, %v505_v53 }
 0x10e   : > { %v515_v59 = vmul.f32 0.044715, %v507_v55  ;;  %v524_v4 = vadd.f32 %v520_v0, %v504_v52  ;;  %v526_v6 = vadd.f32 %v522_v2, %v506_v54  ;;  %v511_v20 = vmul.f32 0.5, %v507_v55 }
 0x10f   : > { %v517_v61 = vmul.f32 %v513_v57, %v505_v53 }
 0x110   : > { %v519_v63 = vmul.f32 %v515_v59, %v507_v55  ;;  %v528_v8 = vmul.f32 0.7978846, %v524_v4  ;;  %v530_v10 = vmul.f32 0.7978846, %v526_v6 }
 0x111   : > { %v521_v1 = vmul.f32 %v517_v61, %v505_v53 }
 0x112   : > { %v523_v3 = vmul.f32 %v519_v63, %v507_v55  ;;  %891 = vtanh.f32 %v528_v8 }
 0x113   : > { %v525_v5 = vadd.f32 %v521_v1, %v505_v53 }
 0x114   : > { %v527_v7 = vadd.f32 %v523_v3, %v507_v55 }
 0x115   : > { %v529_v9 = vmul.f32 0.7978846, %v525_v5 }
 0x116   : > { %v531_v11 = vmul.f32 0.7978846, %v527_v7 }
 0x117   : > { %893 = vtanh.f32 %v529_v9 }
 0x118   : > { %895 = vtanh.f32 %v530_v10  ;;  %v892_v13 = vpop.eup %891 }
 0x119   : > { %897 = vtanh.f32 %v531_v11  ;;  %v536_v16 = vadd.f32 1.0, %v892_v13 }
 0x11b   : > { %v540_v22 = vmul.f32 %v536_v16, %v508_v12 }
 0x11d   : > { %v894_v15 = vpop.eup %893 }
 0x11e   : > { %v896_v18 = vpop.eup %895  ;;  %v537_v19 = vadd.f32 1.0, %v894_v15 }
 0x11f   : > { %v898_v21 = vpop.eup %897  ;;  %v538_v23 = vadd.f32 1.0, %v896_v18 }
 0x120   : > { %v541_v24 = vmul.f32 %v537_v19, %v509_v14  ;;  %v539_v25 = vadd.f32 1.0, %v898_v21 }
 0x121   : > { %v542_v26 = vmul.f32 %v538_v23, %v510_v17 }
 0x122   : > { %v785_v27 = vpack.c.bf16 %v541_v24, %v540_v22  ;;  %v543_v28 = vmul.f32 %v539_v25, %v511_v20 }
 0x124   : > { %786 = vst [vmem:[%s1155_s25] sm:$0xff] %v785_v27   ;;  %v790_v29 = vpack.c.bf16 %v543_v28, %v542_v26 }
 0x126   : > { %792 = vst [vmem:[%s1155_s25 + $0x8] sm:$0xff] %v790_v29  }
 0x127 PF: > { %558 = sbr.rel (!%p1102_p12) target bundleno = 304 (0x130), region = 123  ;;  %s770_s14 = sshll.u32 (%p1102_p12), %s973_s19, 2 }
 0x128   : > { %s563_s0 = scalar_lea.vmem (%p1102_p12), %s1216_s3, %s770_s14 }
 0x12b   : > { %v580_v30 = vld [vmem:[%s1155_s25] sm:$0xf] (%p1102_p12)  ;;  %v582_v31 = vld [vmem:[%s1155_s25 + $0x4] sm:$0xf] (%p1102_p12) }
 0x12c   : > { %581 = vst [vmem:[%s563_s0] sm:$0xf] %v580_v30 }
 0x12d   : > { %v584_v32 = vld [vmem:[%s1155_s25 + $0x8] sm:$0xf]  ;;  %v586_v33 = vld [vmem:[%s1155_s25 + $0xc] sm:$0xf]  ;;  %583 = vst [vmem:[%s563_s0 + $0x20] sm:$0xf] %v582_v31 }
 0x12e   : > { %585 = vst [vmem:[%s563_s0 + $0x40] sm:$0xf] %v584_v32 }
 0x12f   : > { %587 = vst [vmem:[%s563_s0 + $0x60] sm:$0xf] %v586_v33 }
 0x130 PF: > { %s13_s22 = sadd.s32 1, %s985_s22   ;;  %s1226_s10 = sld [smem:[#allocation6_spill]] }
 0x131   : > { %p10_p6 = scmp.ge.s32.totalorder %s13_s22, 18   ;;  %s1227_s12 = smov %s949_s13 }
 0x132   : > { %s1228_s13 = smov %s1100_s9  ;;  %s1229_s14 = smov %s957_s15 }
 0x133   : > { %s1230_s15 = smov %s1097_s8  ;;  %s1231_s16 = smov %s965_s17 }
 0x134   : > { %s1232_s17 = smov %s1083_s30  ;;  %s1233_s18 = smov %s977_s20 }
 0x135   : > { %s1234_s19 = smov %s981_s21  ;;  %s1235_s20 = smov %s1238_s24 }
 0x136   : > { %s1236_s21 = smov %s1226_s10  ;;  %12 = sbr.rel (!%p10_p6) target bundleno = 9 (0x9), region = 206 }

</bundles_post_ra>
